<compile_context>
chip_gen: v7x
topology: tpu7x:2x2x1
jax: 0.10.0
libtpu: 0.0.40
codegen_flags: <defaults>
</compile_context>

<pallas_src>
import functools

import numpy as np
import jax
import jax.numpy as jnp
from jax.experimental import pallas as pl
from jax.experimental.pallas import tpu as pltpu

MXU_DTYPE = jnp.bfloat16


# ----------------------------------------------------------------------------
# Fused Conv3x3 (stride 1, pad 1) + bias + ReLU + MaxPool 2x2 (stride 2)
# ----------------------------------------------------------------------------
def _conv_pool_kernel(x_ref, be_ref, bo_ref, se_ref, so_ref, b_ref, o_ref, *, H):
    # x_ref : (1, H+2, (W+2)*Cin)  padded image, channels innermost on lanes
    # be/bo : (3, (W+2)*Cin, Wo*Cout)  banded weights for even / odd out columns
    # se/so : (Ho, H)   0/1 row-selection matrices for the height pool
    # b_ref : (1, Wo*Cout)  bias tiled over the pooled width
    # o_ref : (1, Ho, Wo*Cout)
    x = x_ref[0]                                          # (H+2, (W+2)*Cin), bf16
    n_out = be_ref.shape[-1]                              # Wo*Cout
    acc_e = jnp.zeros((H, n_out), jnp.float32)            # conv rows, even out cols
    acc_o = jnp.zeros((H, n_out), jnp.float32)            # conv rows, odd  out cols
    for dy in range(3):                                   # static unroll: 6 MXU matmuls
        xs = x[dy:dy + H, :]                              # row-shifted view in VMEM
        acc_e += jnp.dot(xs, be_ref[dy], preferred_element_type=jnp.float32)
        acc_o += jnp.dot(xs, bo_ref[dy], preferred_element_type=jnp.float32)
    wmax = jnp.maximum(acc_e, acc_o)                      # width-pooled, (H, Wo*Cout)
    # Height pool: pick even / odd conv rows via tiny 0/1 matmuls, then max.
    p_e = jnp.dot(se_ref[...], wmax, preferred_element_type=jnp.float32)
    p_o = jnp.dot(so_ref[...], wmax, preferred_element_type=jnp.float32)
    # bias/ReLU commute with the max-pool (bias is constant over each window).
    out = jnp.maximum(p_e, p_o) + b_ref[...]
    o_ref[0] = jnp.maximum(out, 0.0).astype(o_ref.dtype)


def conv3x3_relu_pool(x_nhwc, w_hwio, b):
    """x_nhwc: (N,H,W,Cin); w_hwio: (3,3,Cin,Cout); b: (Cout,).

    Returns (N, H//2, (W//2)*Cout), i.e. the pooled NHWC activation with (w, c)
    flattened onto the lane axis, in bf16.
    """
    N, H, W, Cin = x_nhwc.shape
    Cout = w_hwio.shape[-1]
    Hp, Wp = H + 2, W + 2
    Ho, Wo = H // 2, W // 2

    # ---- weight preprocessing (glue; activations are untouched) -------------
    # B[dy][px] of shape ((W+2)*Cin, Wo*Cout) such that
    #   (Xpad[h+dy, :] @ B[dy][px])[s*Cout+co] = the dy-row contribution of the
    #   conv output at (h, 2*s+px, co).
    def banded(px):
        mats = []
        for dy in range(3):
            acc = None
            for dx in range(3):
                e = np.zeros((Wp, Wo), np.float32)
                e[2 * np.arange(Wo) + px + dx, np.arange(Wo)] = 1.0
                blk = jnp.kron(jnp.asarray(e), w_hwio[dy, dx])   # (Wp*Cin, Wo*Cout)
                acc = blk if acc is None else acc + blk
            mats.append(acc)
        return jnp.stack(mats).astype(MXU_DTYPE)                 # (3, Wp*Cin, Wo*Cout)

    b_even, b_odd = banded(0), banded(1)

    s_even = np.zeros((Ho, H), np.float32)
    s_even[np.arange(Ho), 2 * np.arange(Ho)] = 1.0
    s_odd = np.zeros((Ho, H), np.float32)
    s_odd[np.arange(Ho), 2 * np.arange(Ho) + 1] = 1.0

    bias_lane = jnp.tile(b, Wo).reshape(1, Wo * Cout).astype(jnp.float32)

    # ---- activation glue: SAME padding, (w, c) flattened onto lanes ----------
    x_pad = jnp.pad(x_nhwc, ((0, 0), (1, 1), (1, 1), (0, 0)))
    x2d = x_pad.reshape(N, Hp, Wp * Cin).astype(MXU_DTYPE)

    kern = functools.partial(_conv_pool_kernel, H=H)
    return pl.pallas_call(
        kern,
        out_shape=jax.ShapeDtypeStruct((N, Ho, Wo * Cout), MXU_DTYPE),
        grid=(N,),
        in_specs=[
            pl.BlockSpec((1, Hp, Wp * Cin), lambda n: (n, 0, 0)),
            pl.BlockSpec((3, Wp * Cin, Wo * Cout), lambda n: (0, 0, 0)),
            pl.BlockSpec((3, Wp * Cin, Wo * Cout), lambda n: (0, 0, 0)),
            pl.BlockSpec((Ho, H), lambda n: (0, 0)),
            pl.BlockSpec((Ho, H), lambda n: (0, 0)),
            pl.BlockSpec((1, Wo * Cout), lambda n: (0, 0)),
        ],
        out_specs=pl.BlockSpec((1, Ho, Wo * Cout), lambda n: (n, 0, 0)),
        compiler_params=pltpu.CompilerParams(dimension_semantics=("parallel",)),
    )(x2d, b_even, b_odd, jnp.asarray(s_even), jnp.asarray(s_odd), bias_lane)


# ----------------------------------------------------------------------------
# Fused classifier: fc1 -> ReLU -> fc2 (intermediate stays in VMEM)
# ----------------------------------------------------------------------------
def _mlp_kernel(x_ref, w1_ref, b1_ref, w2_ref, b2_ref, o_ref):
    h = jnp.dot(x_ref[...], w1_ref[...], preferred_element_type=jnp.float32)
    h = jnp.maximum(h + b1_ref[...], 0.0)
    y = jnp.dot(h.astype(w2_ref.dtype), w2_ref[...], preferred_element_type=jnp.float32)
    o_ref[...] = (y + b2_ref[...]).astype(o_ref.dtype)


def mlp(x, w1, b1, w2, b2, *, block_n=128):
    """x: (N,K) bf16-castable; w1: (K,F); w2: (F,C). Returns (N,C) f32."""
    N, K = x.shape
    F = w1.shape[1]
    C = w2.shape[1]
    bn = min(N, block_n)
    return pl.pallas_call(
        _mlp_kernel,
        out_shape=jax.ShapeDtypeStruct((N, C), jnp.float32),
        grid=(pl.cdiv(N, bn),),
        in_specs=[
            pl.BlockSpec((bn, K), lambda i: (i, 0)),
            pl.BlockSpec((K, F), lambda i: (0, 0)),
            pl.BlockSpec((1, F), lambda i: (0, 0)),
            pl.BlockSpec((F, C), lambda i: (0, 0)),
            pl.BlockSpec((1, C), lambda i: (0, 0)),
        ],
        out_specs=pl.BlockSpec((bn, C), lambda i: (i, 0)),
        compiler_params=pltpu.CompilerParams(dimension_semantics=("parallel",)),
    )(x.astype(MXU_DTYPE), w1.astype(MXU_DTYPE),
      b1.reshape(1, F).astype(jnp.float32),
      w2.astype(MXU_DTYPE), b2.reshape(1, C).astype(jnp.float32))


# ----------------------------------------------------------------------------
# Full forward pass (matches CustomCNN.forward)
# ----------------------------------------------------------------------------
def custom_cnn_forward(x_nchw, params):
    N = x_nchw.shape[0]
    x = jnp.transpose(x_nchw, (0, 2, 3, 1))                          # NCHW -> NHWC
    y1 = conv3x3_relu_pool(x, params["conv1_w"], params["conv1_b"])  # (N,14,14*16) bf16
    y1 = y1.reshape(N, 14, 14, 16)                                   # expose channels
    y2 = conv3x3_relu_pool(y1, params["conv2_w"], params["conv2_b"]) # (N,7,7*32) bf16
    # NHWC flatten; fc1_w rows are stored in matching (h, w, c) order (the
    # PyTorch (c, h, w) flatten order is folded into the weight at init time).
    feat = y2.reshape(N, 7 * 7 * 32)
    return mlp(feat, params["fc1_w"], params["fc1_b"],
               params["fc2_w"], params["fc2_b"])


def init_params(key, num_classes):
    ks = jax.random.split(key, 8)

    def u(k, shape, fan_in):
        bound = 1.0 / jnp.sqrt(jnp.float32(fan_in))
        return jax.random.uniform(k, shape, jnp.float32, -bound, bound)

    return {
        # conv weights stored HWIO (== PyTorch OIHW up to transpose)
        "conv1_w": u(ks[0], (3, 3, 1, 16), 1 * 9),
        "conv1_b": u(ks[1], (16,), 1 * 9),
        "conv2_w": u(ks[2], (3, 3, 16, 32), 16 * 9),
        "conv2_b": u(ks[3], (32,), 16 * 9),
        # fc weights stored (in_features, out_features) = PyTorch weight.T,
        # with fc1_w input rows in NHWC (h, w, c) flatten order.
        "fc1_w": u(ks[4], (32 * 7 * 7, 256), 32 * 7 * 7),
        "fc1_b": u(ks[5], (256,), 32 * 7 * 7),
        "fc2_w": u(ks[6], (256, num_classes), 256),
        "fc2_b": u(ks[7], (num_classes,), 256),
    }


def reference_forward(x_nchw, params):
    """Pure-JAX f32 reference for the correctness check."""
    x = jnp.transpose(x_nchw, (0, 2, 3, 1))

    def conv(x, w, b):
        y = jax.lax.conv_general_dilated(
            x, w, window_strides=(1, 1), padding="SAME",
            dimension_numbers=("NHWC", "HWIO", "NHWC"))
        return jax.nn.relu(y + b)

    def pool(x):
        return jax.lax.reduce_window(x, -jnp.inf, jax.lax.max,
                                     (1, 2, 2, 1), (1, 2, 2, 1), "VALID")

    x = pool(conv(x, params["conv1_w"], params["conv1_b"]))
    x = pool(conv(x, params["conv2_w"], params["conv2_b"]))
    x = x.reshape(x.shape[0], -1)              # NHWC flatten (matches fc1_w layout)
    x = jax.nn.relu(x @ params["fc1_w"] + params["fc1_b"])
    return x @ params["fc2_w"] + params["fc2_b"]


if __name__ == "__main__":
    num_classes = 10
    key = jax.random.PRNGKey(0)
    pkey, xkey = jax.random.split(key)
    params = init_params(pkey, num_classes)

    # Input matches the module's implied shape: 1x28x28 images (32*7*7 features).
    x = jax.random.normal(xkey, (2, 1, 28, 28), jnp.float32)   # NCHW like PyTorch

    fwd = jax.jit(custom_cnn_forward)
    out = jax.block_until_ready(fwd(x, params))
    assert out.shape == (2, num_classes), out.shape

    ref = jax.block_until_ready(reference_forward(x, params))
    max_err = float(jnp.max(jnp.abs(out - ref)))
    # bf16 MXU operands with f32 accumulation -> loose-ish tolerance.
    assert jnp.allclose(out, ref, rtol=5e-2, atol=5e-2), max_err

    print("KERNEL_OK")
</pallas_src>

<mosaic_0001>
module attributes {stable_mosaic.version = 11 : i64} {
  func.func @_conv_pool_kernel(%arg0: i32, %arg1: memref<1x30x30xbf16, #tpu.memory_space<vmem>>, %arg2: memref<3x30x224xbf16, #tpu.memory_space<vmem>>, %arg3: memref<3x30x224xbf16, #tpu.memory_space<vmem>>, %arg4: memref<14x28xf32, #tpu.memory_space<vmem>>, %arg5: memref<14x28xf32, #tpu.memory_space<vmem>>, %arg6: memref<1x224xf32, #tpu.memory_space<vmem>>, %arg7: memref<1x14x224xbf16, #tpu.memory_space<vmem>>) attributes {dimension_semantics = [#tpu.dimension_semantics<parallel>], iteration_bounds = array<i64: 2>, scalar_prefetch = 0 : i64, scratch_operands = 0 : i64, tpu.core_type = #tpu.core_type<tc>, window_params = [{transform_indices = @transform_0, window_bounds = array<i64: 1, 30, 30>}, {pipeline_mode = #tpu.pipeline_mode<synchronous>, transform_indices = @transform_1, window_bounds = array<i64: 3, 30, 224>}, {pipeline_mode = #tpu.pipeline_mode<synchronous>, transform_indices = @transform_2, window_bounds = array<i64: 3, 30, 224>}, {pipeline_mode = #tpu.pipeline_mode<synchronous>, transform_indices = @transform_3, window_bounds = array<i64: 14, 28>}, {pipeline_mode = #tpu.pipeline_mode<synchronous>, transform_indices = @transform_4, window_bounds = array<i64: 14, 28>}, {pipeline_mode = #tpu.pipeline_mode<synchronous>, transform_indices = @transform_5, window_bounds = array<i64: 1, 224>}, {transform_indices = @transform_6, window_bounds = array<i64: 1, 14, 224>}]} {
    %c0 = arith.constant 0 : index
    %c0_0 = arith.constant 0 : index
    %c0_1 = arith.constant 0 : index
    %0 = vector.load %arg1[%c0, %c0_0, %c0_1] : memref<1x30x30xbf16, #tpu.memory_space<vmem>>, vector<1x30x30xbf16>
    %1 = vector.shape_cast %0 : vector<1x30x30xbf16> to vector<30x30xbf16>
    %cst = arith.constant 0.000000e+00 : f32
    %2 = vector.broadcast %cst : f32 to vector<28x224xf32>
    %cst_2 = arith.constant 0.000000e+00 : f32
    %3 = vector.broadcast %cst_2 : f32 to vector<28x224xf32>
    %4 = vector.extract_strided_slice %1 {offsets = [0, 0], sizes = [28, 30], strides = [1, 1]} : vector<30x30xbf16> to vector<28x30xbf16>
    %c0_3 = arith.constant 0 : index
    %c0_4 = arith.constant 0 : index
    %c0_5 = arith.constant 0 : index
    %5 = vector.load %arg2[%c0_3, %c0_4, %c0_5] : memref<3x30x224xbf16, #tpu.memory_space<vmem>>, vector<1x30x224xbf16>
    %6 = vector.shape_cast %5 : vector<1x30x224xbf16> to vector<30x224xbf16>
    %cst_6 = arith.constant dense<0.000000e+00> : vector<28x224xf32>
    %7 = tpu.matmul %4, %6, %cst_6 {dimension_numbers = #tpu.dot_dimension_numbers<[1], [0], [0], [1], [0, 0, 1, 1], [], []>} : vector<28x30xbf16>, vector<30x224xbf16>, vector<28x224xf32> -> vector<28x224xf32>
    %8 = arith.addf %2, %7 : vector<28x224xf32>
    %c0_7 = arith.constant 0 : index
    %c0_8 = arith.constant 0 : index
    %c0_9 = arith.constant 0 : index
    %9 = vector.load %arg3[%c0_7, %c0_8, %c0_9] : memref<3x30x224xbf16, #tpu.memory_space<vmem>>, vector<1x30x224xbf16>
    %10 = vector.shape_cast %9 : vector<1x30x224xbf16> to vector<30x224xbf16>
    %cst_10 = arith.constant dense<0.000000e+00> : vector<28x224xf32>
    %11 = tpu.matmul %4, %10, %cst_10 {dimension_numbers = #tpu.dot_dimension_numbers<[1], [0], [0], [1], [0, 0, 1, 1], [], []>} : vector<28x30xbf16>, vector<30x224xbf16>, vector<28x224xf32> -> vector<28x224xf32>
    %12 = arith.addf %3, %11 : vector<28x224xf32>
    %13 = vector.extract_strided_slice %1 {offsets = [1, 0], sizes = [28, 30], strides = [1, 1]} : vector<30x30xbf16> to vector<28x30xbf16>
    %c1 = arith.constant 1 : index
    %c0_11 = arith.constant 0 : index
    %c0_12 = arith.constant 0 : index
    %14 = vector.load %arg2[%c1, %c0_11, %c0_12] : memref<3x30x224xbf16, #tpu.memory_space<vmem>>, vector<1x30x224xbf16>
    %15 = vector.shape_cast %14 : vector<1x30x224xbf16> to vector<30x224xbf16>
    %cst_13 = arith.constant dense<0.000000e+00> : vector<28x224xf32>
    %16 = tpu.matmul %13, %15, %cst_13 {dimension_numbers = #tpu.dot_dimension_numbers<[1], [0], [0], [1], [0, 0, 1, 1], [], []>} : vector<28x30xbf16>, vector<30x224xbf16>, vector<28x224xf32> -> vector<28x224xf32>
    %17 = arith.addf %8, %16 : vector<28x224xf32>
    %c1_14 = arith.constant 1 : index
    %c0_15 = arith.constant 0 : index
    %c0_16 = arith.constant 0 : index
    %18 = vector.load %arg3[%c1_14, %c0_15, %c0_16] : memref<3x30x224xbf16, #tpu.memory_space<vmem>>, vector<1x30x224xbf16>
    %19 = vector.shape_cast %18 : vector<1x30x224xbf16> to vector<30x224xbf16>
    %cst_17 = arith.constant dense<0.000000e+00> : vector<28x224xf32>
    %20 = tpu.matmul %13, %19, %cst_17 {dimension_numbers = #tpu.dot_dimension_numbers<[1], [0], [0], [1], [0, 0, 1, 1], [], []>} : vector<28x30xbf16>, vector<30x224xbf16>, vector<28x224xf32> -> vector<28x224xf32>
    %21 = arith.addf %12, %20 : vector<28x224xf32>
    %22 = vector.extract_strided_slice %1 {offsets = [2, 0], sizes = [28, 30], strides = [1, 1]} : vector<30x30xbf16> to vector<28x30xbf16>
    %c2 = arith.constant 2 : index
    %c0_18 = arith.constant 0 : index
    %c0_19 = arith.constant 0 : index
    %23 = vector.load %arg2[%c2, %c0_18, %c0_19] : memref<3x30x224xbf16, #tpu.memory_space<vmem>>, vector<1x30x224xbf16>
    %24 = vector.shape_cast %23 : vector<1x30x224xbf16> to vector<30x224xbf16>
    %cst_20 = arith.constant dense<0.000000e+00> : vector<28x224xf32>
    %25 = tpu.matmul %22, %24, %cst_20 {dimension_numbers = #tpu.dot_dimension_numbers<[1], [0], [0], [1], [0, 0, 1, 1], [], []>} : vector<28x30xbf16>, vector<30x224xbf16>, vector<28x224xf32> -> vector<28x224xf32>
    %26 = arith.addf %17, %25 : vector<28x224xf32>
    %c2_21 = arith.constant 2 : index
    %c0_22 = arith.constant 0 : index
    %c0_23 = arith.constant 0 : index
    %27 = vector.load %arg3[%c2_21, %c0_22, %c0_23] : memref<3x30x224xbf16, #tpu.memory_space<vmem>>, vector<1x30x224xbf16>
    %28 = vector.shape_cast %27 : vector<1x30x224xbf16> to vector<30x224xbf16>
    %cst_24 = arith.constant dense<0.000000e+00> : vector<28x224xf32>
    %29 = tpu.matmul %22, %28, %cst_24 {dimension_numbers = #tpu.dot_dimension_numbers<[1], [0], [0], [1], [0, 0, 1, 1], [], []>} : vector<28x30xbf16>, vector<30x224xbf16>, vector<28x224xf32> -> vector<28x224xf32>
    %30 = arith.addf %21, %29 : vector<28x224xf32>
    %31 = arith.maximumf %26, %30 : vector<28x224xf32>
    %c0_25 = arith.constant 0 : index
    %c0_26 = arith.constant 0 : index
    %32 = vector.load %arg4[%c0_25, %c0_26] : memref<14x28xf32, #tpu.memory_space<vmem>>, vector<14x28xf32>
    %cst_27 = arith.constant dense<0.000000e+00> : vector<14x224xf32>
    %33 = tpu.matmul %32, %31, %cst_27 {dimension_numbers = #tpu.dot_dimension_numbers<[1], [0], [0], [1], [0, 0, 1, 1], [], []>} : vector<14x28xf32>, vector<28x224xf32>, vector<14x224xf32> -> vector<14x224xf32>
    %c0_28 = arith.constant 0 : index
    %c0_29 = arith.constant 0 : index
    %34 = vector.load %arg5[%c0_28, %c0_29] : memref<14x28xf32, #tpu.memory_space<vmem>>, vector<14x28xf32>
    %cst_30 = arith.constant dense<0.000000e+00> : vector<14x224xf32>
    %35 = tpu.matmul %34, %31, %cst_30 {dimension_numbers = #tpu.dot_dimension_numbers<[1], [0], [0], [1], [0, 0, 1, 1], [], []>} : vector<14x28xf32>, vector<28x224xf32>, vector<14x224xf32> -> vector<14x224xf32>
    %36 = arith.maximumf %33, %35 : vector<14x224xf32>
    %c0_31 = arith.constant 0 : index
    %c0_32 = arith.constant 0 : index
    %37 = vector.load %arg6[%c0_31, %c0_32] : memref<1x224xf32, #tpu.memory_space<vmem>>, vector<1x224xf32>
    %38 = vector.broadcast %37 : vector<1x224xf32> to vector<14x224xf32>
    %39 = arith.addf %36, %38 : vector<14x224xf32>
    %cst_33 = arith.constant 0.000000e+00 : f32
    %40 = vector.broadcast %cst_33 : f32 to vector<14x224xf32>
    %41 = arith.maximumf %39, %40 : vector<14x224xf32>
    %42 = arith.truncf %41 : vector<14x224xf32> to vector<14x224xbf16>
    %c0_34 = arith.constant 0 : index
    %c0_35 = arith.constant 0 : index
    %c0_36 = arith.constant 0 : index
    %43 = vector.load %arg7[%c0_34, %c0_35, %c0_36] : memref<1x14x224xbf16, #tpu.memory_space<vmem>>, vector<1x14x224xbf16>
    %44 = vector.shape_cast %43 : vector<1x14x224xbf16> to vector<14x224xbf16>
    %45 = vector.shape_cast %42 : vector<14x224xbf16> to vector<1x14x224xbf16>
    tpu.vector_store %arg7[%c0_34, %c0_35, %c0_36], %45 {strides = array<i32>} : memref<1x14x224xbf16, #tpu.memory_space<vmem>>, vector<1x14x224xbf16>,
    return
  }
  func.func @transform_0(%arg0: i32) -> (i32, i32, i32) {
    %c0_i32 = arith.constant 0 : i32
    %c0_i32_0 = arith.constant 0 : i32
    %c0_i32_1 = arith.constant 0 : i32
    return %arg0, %c0_i32, %c0_i32_0 : i32, i32, i32
  }
  func.func @transform_1(%arg0: i32) -> (i32, i32, i32) {
    %c0_i32 = arith.constant 0 : i32
    %c0_i32_0 = arith.constant 0 : i32
    %c0_i32_1 = arith.constant 0 : i32
    %c0_i32_2 = arith.constant 0 : i32
    return %c0_i32, %c0_i32_0, %c0_i32_1 : i32, i32, i32
  }
  func.func @transform_2(%arg0: i32) -> (i32, i32, i32) {
    %c0_i32 = arith.constant 0 : i32
    %c0_i32_0 = arith.constant 0 : i32
    %c0_i32_1 = arith.constant 0 : i32
    %c0_i32_2 = arith.constant 0 : i32
    return %c0_i32, %c0_i32_0, %c0_i32_1 : i32, i32, i32
  }
  func.func @transform_3(%arg0: i32) -> (i32, i32) {
    %c0_i32 = arith.constant 0 : i32
    %c0_i32_0 = arith.constant 0 : i32
    %c0_i32_1 = arith.constant 0 : i32
    return %c0_i32, %c0_i32_0 : i32, i32
  }
  func.func @transform_4(%arg0: i32) -> (i32, i32) {
    %c0_i32 = arith.constant 0 : i32
    %c0_i32_0 = arith.constant 0 : i32
    %c0_i32_1 = arith.constant 0 : i32
    return %c0_i32, %c0_i32_0 : i32, i32
  }
  func.func @transform_5(%arg0: i32) -> (i32, i32) {
    %c0_i32 = arith.constant 0 : i32
    %c0_i32_0 = arith.constant 0 : i32
    %c0_i32_1 = arith.constant 0 : i32
    return %c0_i32, %c0_i32_0 : i32, i32
  }
  func.func @transform_6(%arg0: i32) -> (i32, i32, i32) {
    %c0_i32 = arith.constant 0 : i32
    %c0_i32_0 = arith.constant 0 : i32
    %c0_i32_1 = arith.constant 0 : i32
    return %arg0, %c0_i32, %c0_i32_0 : i32, i32, i32
  }
}

module attributes {stable_mosaic.version = 11 : i64} {
  func.func @_conv_pool_kernel(%arg0: i32, %arg1: memref<1x16x256xbf16, #tpu.memory_space<vmem>>, %arg2: memref<3x256x224xbf16, #tpu.memory_space<vmem>>, %arg3: memref<3x256x224xbf16, #tpu.memory_space<vmem>>, %arg4: memref<7x14xf32, #tpu.memory_space<vmem>>, %arg5: memref<7x14xf32, #tpu.memory_space<vmem>>, %arg6: memref<1x224xf32, #tpu.memory_space<vmem>>, %arg7: memref<1x7x224xbf16, #tpu.memory_space<vmem>>) attributes {dimension_semantics = [#tpu.dimension_semantics<parallel>], iteration_bounds = array<i64: 2>, scalar_prefetch = 0 : i64, scratch_operands = 0 : i64, tpu.core_type = #tpu.core_type<tc>, window_params = [{transform_indices = @transform_0, window_bounds = array<i64: 1, 16, 256>}, {pipeline_mode = #tpu.pipeline_mode<synchronous>, transform_indices = @transform_1, window_bounds = array<i64: 3, 256, 224>}, {pipeline_mode = #tpu.pipeline_mode<synchronous>, transform_indices = @transform_2, window_bounds = array<i64: 3, 256, 224>}, {pipeline_mode = #tpu.pipeline_mode<synchronous>, transform_indices = @transform_3, window_bounds = array<i64: 7, 14>}, {pipeline_mode = #tpu.pipeline_mode<synchronous>, transform_indices = @transform_4, window_bounds = array<i64: 7, 14>}, {pipeline_mode = #tpu.pipeline_mode<synchronous>, transform_indices = @transform_5, window_bounds = array<i64: 1, 224>}, {transform_indices = @transform_6, window_bounds = array<i64: 1, 7, 224>}]} {
    %c0 = arith.constant 0 : index
    %c0_0 = arith.constant 0 : index
    %c0_1 = arith.constant 0 : index
    %0 = vector.load %arg1[%c0, %c0_0, %c0_1] : memref<1x16x256xbf16, #tpu.memory_space<vmem>>, vector<1x16x256xbf16>
    %1 = vector.shape_cast %0 : vector<1x16x256xbf16> to vector<16x256xbf16>
    %cst = arith.constant 0.000000e+00 : f32
    %2 = vector.broadcast %cst : f32 to vector<14x224xf32>
    %cst_2 = arith.constant 0.000000e+00 : f32
    %3 = vector.broadcast %cst_2 : f32 to vector<14x224xf32>
    %4 = vector.extract_strided_slice %1 {offsets = [0, 0], sizes = [14, 256], strides = [1, 1]} : vector<16x256xbf16> to vector<14x256xbf16>
    %c0_3 = arith.constant 0 : index
    %c0_4 = arith.constant 0 : index
    %c0_5 = arith.constant 0 : index
    %5 = vector.load %arg2[%c0_3, %c0_4, %c0_5] : memref<3x256x224xbf16, #tpu.memory_space<vmem>>, vector<1x256x224xbf16>
    %6 = vector.shape_cast %5 : vector<1x256x224xbf16> to vector<256x224xbf16>
    %cst_6 = arith.constant dense<0.000000e+00> : vector<14x224xf32>
    %7 = tpu.matmul %4, %6, %cst_6 {dimension_numbers = #tpu.dot_dimension_numbers<[1], [0], [0], [1], [0, 0, 1, 1], [], []>} : vector<14x256xbf16>, vector<256x224xbf16>, vector<14x224xf32> -> vector<14x224xf32>
    %8 = arith.addf %2, %7 : vector<14x224xf32>
    %c0_7 = arith.constant 0 : index
    %c0_8 = arith.constant 0 : index
    %c0_9 = arith.constant 0 : index
    %9 = vector.load %arg3[%c0_7, %c0_8, %c0_9] : memref<3x256x224xbf16, #tpu.memory_space<vmem>>, vector<1x256x224xbf16>
    %10 = vector.shape_cast %9 : vector<1x256x224xbf16> to vector<256x224xbf16>
    %cst_10 = arith.constant dense<0.000000e+00> : vector<14x224xf32>
    %11 = tpu.matmul %4, %10, %cst_10 {dimension_numbers = #tpu.dot_dimension_numbers<[1], [0], [0], [1], [0, 0, 1, 1], [], []>} : vector<14x256xbf16>, vector<256x224xbf16>, vector<14x224xf32> -> vector<14x224xf32>
    %12 = arith.addf %3, %11 : vector<14x224xf32>
    %13 = vector.extract_strided_slice %1 {offsets = [1, 0], sizes = [14, 256], strides = [1, 1]} : vector<16x256xbf16> to vector<14x256xbf16>
    %c1 = arith.constant 1 : index
    %c0_11 = arith.constant 0 : index
    %c0_12 = arith.constant 0 : index
    %14 = vector.load %arg2[%c1, %c0_11, %c0_12] : memref<3x256x224xbf16, #tpu.memory_space<vmem>>, vector<1x256x224xbf16>
    %15 = vector.shape_cast %14 : vector<1x256x224xbf16> to vector<256x224xbf16>
    %cst_13 = arith.constant dense<0.000000e+00> : vector<14x224xf32>
    %16 = tpu.matmul %13, %15, %cst_13 {dimension_numbers = #tpu.dot_dimension_numbers<[1], [0], [0], [1], [0, 0, 1, 1], [], []>} : vector<14x256xbf16>, vector<256x224xbf16>, vector<14x224xf32> -> vector<14x224xf32>
    %17 = arith.addf %8, %16 : vector<14x224xf32>
    %c1_14 = arith.constant 1 : index
    %c0_15 = arith.constant 0 : index
    %c0_16 = arith.constant 0 : index
    %18 = vector.load %arg3[%c1_14, %c0_15, %c0_16] : memref<3x256x224xbf16, #tpu.memory_space<vmem>>, vector<1x256x224xbf16>
    %19 = vector.shape_cast %18 : vector<1x256x224xbf16> to vector<256x224xbf16>
    %cst_17 = arith.constant dense<0.000000e+00> : vector<14x224xf32>
    %20 = tpu.matmul %13, %19, %cst_17 {dimension_numbers = #tpu.dot_dimension_numbers<[1], [0], [0], [1], [0, 0, 1, 1], [], []>} : vector<14x256xbf16>, vector<256x224xbf16>, vector<14x224xf32> -> vector<14x224xf32>
    %21 = arith.addf %12, %20 : vector<14x224xf32>
    %22 = vector.extract_strided_slice %1 {offsets = [2, 0], sizes = [14, 256], strides = [1, 1]} : vector<16x256xbf16> to vector<14x256xbf16>
    %c2 = arith.constant 2 : index
    %c0_18 = arith.constant 0 : index
    %c0_19 = arith.constant 0 : index
    %23 = vector.load %arg2[%c2, %c0_18, %c0_19] : memref<3x256x224xbf16, #tpu.memory_space<vmem>>, vector<1x256x224xbf16>
    %24 = vector.shape_cast %23 : vector<1x256x224xbf16> to vector<256x224xbf16>
    %cst_20 = arith.constant dense<0.000000e+00> : vector<14x224xf32>
    %25 = tpu.matmul %22, %24, %cst_20 {dimension_numbers = #tpu.dot_dimension_numbers<[1], [0], [0], [1], [0, 0, 1, 1], [], []>} : vector<14x256xbf16>, vector<256x224xbf16>, vector<14x224xf32> -> vector<14x224xf32>
    %26 = arith.addf %17, %25 : vector<14x224xf32>
    %c2_21 = arith.constant 2 : index
    %c0_22 = arith.constant 0 : index
    %c0_23 = arith.constant 0 : index
    %27 = vector.load %arg3[%c2_21, %c0_22, %c0_23] : memref<3x256x224xbf16, #tpu.memory_space<vmem>>, vector<1x256x224xbf16>
    %28 = vector.shape_cast %27 : vector<1x256x224xbf16> to vector<256x224xbf16>
    %cst_24 = arith.constant dense<0.000000e+00> : vector<14x224xf32>
    %29 = tpu.matmul %22, %28, %cst_24 {dimension_numbers = #tpu.dot_dimension_numbers<[1], [0], [0], [1], [0, 0, 1, 1], [], []>} : vector<14x256xbf16>, vector<256x224xbf16>, vector<14x224xf32> -> vector<14x224xf32>
    %30 = arith.addf %21, %29 : vector<14x224xf32>
    %31 = arith.maximumf %26, %30 : vector<14x224xf32>
    %c0_25 = arith.constant 0 : index
    %c0_26 = arith.constant 0 : index
    %32 = vector.load %arg4[%c0_25, %c0_26] : memref<7x14xf32, #tpu.memory_space<vmem>>, vector<7x14xf32>
    %cst_27 = arith.constant dense<0.000000e+00> : vector<7x224xf32>
    %33 = tpu.matmul %32, %31, %cst_27 {dimension_numbers = #tpu.dot_dimension_numbers<[1], [0], [0], [1], [0, 0, 1, 1], [], []>} : vector<7x14xf32>, vector<14x224xf32>, vector<7x224xf32> -> vector<7x224xf32>
    %c0_28 = arith.constant 0 : index
    %c0_29 = arith.constant 0 : index
    %34 = vector.load %arg5[%c0_28, %c0_29] : memref<7x14xf32, #tpu.memory_space<vmem>>, vector<7x14xf32>
    %cst_30 = arith.constant dense<0.000000e+00> : vector<7x224xf32>
    %35 = tpu.matmul %34, %31, %cst_30 {dimension_numbers = #tpu.dot_dimension_numbers<[1], [0], [0], [1], [0, 0, 1, 1], [], []>} : vector<7x14xf32>, vector<14x224xf32>, vector<7x224xf32> -> vector<7x224xf32>
    %36 = arith.maximumf %33, %35 : vector<7x224xf32>
    %c0_31 = arith.constant 0 : index
    %c0_32 = arith.constant 0 : index
    %37 = vector.load %arg6[%c0_31, %c0_32] : memref<1x224xf32, #tpu.memory_space<vmem>>, vector<1x224xf32>
    %38 = vector.broadcast %37 : vector<1x224xf32> to vector<7x224xf32>
    %39 = arith.addf %36, %38 : vector<7x224xf32>
    %cst_33 = arith.constant 0.000000e+00 : f32
    %40 = vector.broadcast %cst_33 : f32 to vector<7x224xf32>
    %41 = arith.maximumf %39, %40 : vector<7x224xf32>
    %42 = arith.truncf %41 : vector<7x224xf32> to vector<7x224xbf16>
    %c0_34 = arith.constant 0 : index
    %c0_35 = arith.constant 0 : index
    %c0_36 = arith.constant 0 : index
    %43 = vector.load %arg7[%c0_34, %c0_35, %c0_36] : memref<1x7x224xbf16, #tpu.memory_space<vmem>>, vector<1x7x224xbf16>
    %44 = vector.shape_cast %43 : vector<1x7x224xbf16> to vector<7x224xbf16>
    %45 = vector.shape_cast %42 : vector<7x224xbf16> to vector<1x7x224xbf16>
    tpu.vector_store %arg7[%c0_34, %c0_35, %c0_36], %45 {strides = array<i32>} : memref<1x7x224xbf16, #tpu.memory_space<vmem>>, vector<1x7x224xbf16>,
    return
  }
  func.func @transform_0(%arg0: i32) -> (i32, i32, i32) {
    %c0_i32 = arith.constant 0 : i32
    %c0_i32_0 = arith.constant 0 : i32
    %c0_i32_1 = arith.constant 0 : i32
    return %arg0, %c0_i32, %c0_i32_0 : i32, i32, i32
  }
  func.func @transform_1(%arg0: i32) -> (i32, i32, i32) {
    %c0_i32 = arith.constant 0 : i32
    %c0_i32_0 = arith.constant 0 : i32
    %c0_i32_1 = arith.constant 0 : i32
    %c0_i32_2 = arith.constant 0 : i32
    return %c0_i32, %c0_i32_0, %c0_i32_1 : i32, i32, i32
  }
  func.func @transform_2(%arg0: i32) -> (i32, i32, i32) {
    %c0_i32 = arith.constant 0 : i32
    %c0_i32_0 = arith.constant 0 : i32
    %c0_i32_1 = arith.constant 0 : i32
    %c0_i32_2 = arith.constant 0 : i32
    return %c0_i32, %c0_i32_0, %c0_i32_1 : i32, i32, i32
  }
  func.func @transform_3(%arg0: i32) -> (i32, i32) {
    %c0_i32 = arith.constant 0 : i32
    %c0_i32_0 = arith.constant 0 : i32
    %c0_i32_1 = arith.constant 0 : i32
    return %c0_i32, %c0_i32_0 : i32, i32
  }
  func.func @transform_4(%arg0: i32) -> (i32, i32) {
    %c0_i32 = arith.constant 0 : i32
    %c0_i32_0 = arith.constant 0 : i32
    %c0_i32_1 = arith.constant 0 : i32
    return %c0_i32, %c0_i32_0 : i32, i32
  }
  func.func @transform_5(%arg0: i32) -> (i32, i32) {
    %c0_i32 = arith.constant 0 : i32
    %c0_i32_0 = arith.constant 0 : i32
    %c0_i32_1 = arith.constant 0 : i32
    return %c0_i32, %c0_i32_0 : i32, i32
  }
  func.func @transform_6(%arg0: i32) -> (i32, i32, i32) {
    %c0_i32 = arith.constant 0 : i32
    %c0_i32_0 = arith.constant 0 : i32
    %c0_i32_1 = arith.constant 0 : i32
    return %arg0, %c0_i32, %c0_i32_0 : i32, i32, i32
  }
}

module attributes {stable_mosaic.version = 11 : i64} {
  func.func @_mlp_kernel(%arg0: i32, %arg1: memref<2x1568xbf16, #tpu.memory_space<vmem>>, %arg2: memref<1568x256xbf16, #tpu.memory_space<vmem>>, %arg3: memref<1x256xf32, #tpu.memory_space<vmem>>, %arg4: memref<256x10xbf16, #tpu.memory_space<vmem>>, %arg5: memref<1x10xf32, #tpu.memory_space<vmem>>, %arg6: memref<2x10xf32, #tpu.memory_space<vmem>>) attributes {dimension_semantics = [#tpu.dimension_semantics<parallel>], iteration_bounds = array<i64: 1>, scalar_prefetch = 0 : i64, scratch_operands = 0 : i64, tpu.core_type = #tpu.core_type<tc>, window_params = [{transform_indices = @transform_0, window_bounds = array<i64: 2, 1568>}, {pipeline_mode = #tpu.pipeline_mode<synchronous>, transform_indices = @transform_1, window_bounds = array<i64: 1568, 256>}, {pipeline_mode = #tpu.pipeline_mode<synchronous>, transform_indices = @transform_2, window_bounds = array<i64: 1, 256>}, {pipeline_mode = #tpu.pipeline_mode<synchronous>, transform_indices = @transform_3, window_bounds = array<i64: 256, 10>}, {pipeline_mode = #tpu.pipeline_mode<synchronous>, transform_indices = @transform_4, window_bounds = array<i64: 1, 10>}, {transform_indices = @transform_5, window_bounds = array<i64: 2, 10>}]} {
    %c0 = arith.constant 0 : index
    %c0_0 = arith.constant 0 : index
    %0 = vector.load %arg1[%c0, %c0_0] : memref<2x1568xbf16, #tpu.memory_space<vmem>>, vector<2x1568xbf16>
    %c0_1 = arith.constant 0 : index
    %c0_2 = arith.constant 0 : index
    %1 = vector.load %arg2[%c0_1, %c0_2] : memref<1568x256xbf16, #tpu.memory_space<vmem>>, vector<1568x256xbf16>
    %cst = arith.constant dense<0.000000e+00> : vector<2x256xf32>
    %2 = tpu.matmul %0, %1, %cst {dimension_numbers = #tpu.dot_dimension_numbers<[1], [0], [0], [1], [0, 0, 1, 1], [], []>} : vector<2x1568xbf16>, vector<1568x256xbf16>, vector<2x256xf32> -> vector<2x256xf32>
    %c0_3 = arith.constant 0 : index
    %c0_4 = arith.constant 0 : index
    %3 = vector.load %arg3[%c0_3, %c0_4] : memref<1x256xf32, #tpu.memory_space<vmem>>, vector<1x256xf32>
    %4 = vector.broadcast %3 : vector<1x256xf32> to vector<2x256xf32>
    %5 = arith.addf %2, %4 : vector<2x256xf32>
    %cst_5 = arith.constant 0.000000e+00 : f32
    %6 = vector.broadcast %cst_5 : f32 to vector<2x256xf32>
    %7 = arith.maximumf %5, %6 : vector<2x256xf32>
    %8 = arith.truncf %7 : vector<2x256xf32> to vector<2x256xbf16>
    %c0_6 = arith.constant 0 : index
    %c0_7 = arith.constant 0 : index
    %9 = vector.load %arg4[%c0_6, %c0_7] : memref<256x10xbf16, #tpu.memory_space<vmem>>, vector<256x10xbf16>
    %cst_8 = arith.constant dense<0.000000e+00> : vector<2x10xf32>
    %10 = tpu.matmul %8, %9, %cst_8 {dimension_numbers = #tpu.dot_dimension_numbers<[1], [0], [0], [1], [0, 0, 1, 1], [], []>} : vector<2x256xbf16>, vector<256x10xbf16>, vector<2x10xf32> -> vector<2x10xf32>
    %c0_9 = arith.constant 0 : index
    %c0_10 = arith.constant 0 : index
    %11 = vector.load %arg5[%c0_9, %c0_10] : memref<1x10xf32, #tpu.memory_space<vmem>>, vector<1x10xf32>
    %12 = vector.broadcast %11 : vector<1x10xf32> to vector<2x10xf32>
    %13 = arith.addf %10, %12 : vector<2x10xf32>
    %c0_11 = arith.constant 0 : index
    %c0_12 = arith.constant 0 : index
    %14 = vector.load %arg6[%c0_11, %c0_12] : memref<2x10xf32, #tpu.memory_space<vmem>>, vector<2x10xf32>
    tpu.vector_store %arg6[%c0_11, %c0_12], %13 {strides = array<i32>} : memref<2x10xf32, #tpu.memory_space<vmem>>, vector<2x10xf32>,
    return
  }
  func.func @transform_0(%arg0: i32) -> (i32, i32) {
    %c0_i32 = arith.constant 0 : i32
    %c0_i32_0 = arith.constant 0 : i32
    return %arg0, %c0_i32 : i32, i32
  }
  func.func @transform_1(%arg0: i32) -> (i32, i32) {
    %c0_i32 = arith.constant 0 : i32
    %c0_i32_0 = arith.constant 0 : i32
    %c0_i32_1 = arith.constant 0 : i32
    return %c0_i32, %c0_i32_0 : i32, i32
  }
  func.func @transform_2(%arg0: i32) -> (i32, i32) {
    %c0_i32 = arith.constant 0 : i32
    %c0_i32_0 = arith.constant 0 : i32
    %c0_i32_1 = arith.constant 0 : i32
    return %c0_i32, %c0_i32_0 : i32, i32
  }
  func.func @transform_3(%arg0: i32) -> (i32, i32) {
    %c0_i32 = arith.constant 0 : i32
    %c0_i32_0 = arith.constant 0 : i32
    %c0_i32_1 = arith.constant 0 : i32
    return %c0_i32, %c0_i32_0 : i32, i32
  }
  func.func @transform_4(%arg0: i32) -> (i32, i32) {
    %c0_i32 = arith.constant 0 : i32
    %c0_i32_0 = arith.constant 0 : i32
    %c0_i32_1 = arith.constant 0 : i32
    return %c0_i32, %c0_i32_0 : i32, i32
  }
  func.func @transform_5(%arg0: i32) -> (i32, i32) {
    %c0_i32 = arith.constant 0 : i32
    %c0_i32_0 = arith.constant 0 : i32
    return %arg0, %c0_i32 : i32, i32
  }
}

</mosaic_0001>

<bundles_post_ra>
// kernel: tile.14
= control target key start
LH: loop header
LB: loop body
LE: loop exit
PB: predicated region body
PF: predicated region fallthrough
CT: control target
= control target key end

     0   :  { %s19_s8 = smov 3  ;;  %s79_s9 = smov 112   ;;  %vm4_vm0 = vcmask 130048   ;;  %vm10_vm1 = vcmask 1048448   ;;  %vm16_vm2 = vcmask 917248   ;;  %vm23_vm3 = vcmask 786048   ;;  %s126_s0 = inlined_call_operand.vmem [shape: f32[14,16], index: 0, kind: input, shape index: {}]   ;;  %s127_s1 = inlined_call_operand.vmem [shape: f32[1,224], index: 1, kind: output, shape index: {}]  }
   0x1   :  { %v64_v0 = vld [vmem:[%s126_s0 + $0x7] sm:$0x1]   ;;  %v66_v1 = vld [vmem:[%s126_s0 + $0x5] ss:$8 sm:%s19_s8]   ;;  %s80_s12 = smov 80   ;;  %s26_s15 = smov 3 }
   0x2   :  { %8 = vrot.lane.b32.xlu0 %v64_v0, %s79_s9  ;;  %21 = vrot.lane.b32.xlu1 %v66_v1, %s80_s12  ;;  %v65_v2 = vld [vmem:[%s126_s0 + $0x6] sm:$0x1]   ;;  %s33_s18 = smov 3  ;;  %s40_s19 = smov 3  ;;  %vm30_vm4 = vcmask 654848   ;;  %vm37_vm5 = vcmask 523648  }
   0x3   :  { %v67_v3 = vld [vmem:[%s126_s0 + $0x4] ss:$8 sm:%s26_s15]   ;;  %s81_s20 = smov 96   ;;  %s82_s21 = smov 64   ;;  %v68_v4 = vld [vmem:[%s126_s0 + $0x3] ss:$8 sm:%s33_s18]  }
   0x4   :  { %s2_s24 = smov 3  ;;  %v69_v5 = vld [vmem:[%s126_s0 + $0x2] ss:$8 sm:%s40_s19]   ;;  %s47_s27 = smov 3  ;;  %vm44_vm6 = vcmask 392448   ;;  %vm51_vm7 = vcmask 261248  }
   0x5   :  { %v3_v6 = vld [vmem:[%s126_s0] ss:$8 sm:%s2_s24]   ;;  %s83_s30 = smov 48   ;;  %s84_s2 = smov 32   ;;  %v70_v7 = vld [vmem:[%s126_s0 + $0x1] ss:$8 sm:%s47_s27]  }
   0x6   :  { %14 = vrot.lane.b32.xlu0 %v65_v2, %s81_s20  ;;  %28 = vrot.lane.b32.xlu1 %v67_v3, %s82_s21  ;;  %5 = vst.msk [vmem:[#allocation0] ss:$8 sm:$0x3] %vm4_vm0, %v3_v6   ;;  %s85_s0 = smov 16  }
   0xa   :  { %35 = vrot.lane.b32.xlu0 %v68_v4, %s83_s30  ;;  %42 = vrot.lane.b32.xlu1 %v69_v5, %s84_s2 }
   0xe   :  { %49 = vrot.lane.b32.xlu0 %v70_v7, %s85_s0 }
  0x74   :  { %v9_v8 = vpop.permute.xlu0 %8   ;;  %v22_v9 = vpop.permute.xlu1 %21  }
  0x75   :  { %11 = vst.msk [vmem:[#allocation0] sm:$0x1] %vm10_vm1, %v9_v8  }
  0x78   :  { %v15_v10 = vpop.permute.xlu0 %14   ;;  %v29_v11 = vpop.permute.xlu1 %28  }
  0x79   :  { %17 = vst.msk [vmem:[#allocation0] sm:$0x1] %vm16_vm2, %v15_v10  }
  0x7a   :  { %24 = vst.msk [vmem:[#allocation0] ss:$8 sm:$0x3] %vm23_vm3, %v22_v9  }
  0x7b   :  { %31 = vst.msk [vmem:[#allocation0] ss:$8 sm:$0x3] %vm30_vm4, %v29_v11  }
  0x7c   :  { %v36_v12 = vpop.permute.xlu0 %35   ;;  %v43_v13 = vpop.permute.xlu1 %42  }
  0x7d   :  { %38 = vst.msk [vmem:[#allocation0] ss:$8 sm:$0x3] %vm37_vm5, %v36_v12  }
  0x7e   :  { %45 = vst.msk [vmem:[#allocation0] ss:$8 sm:$0x3] %vm44_vm6, %v43_v13  }
  0x80   :  { %v50_v14 = vpop.permute.xlu0 %49  }
  0x81   :  { %52 = vst.msk [vmem:[#allocation0] ss:$8 sm:$0x3] %vm51_vm7, %v50_v14  }
  0x88   :  { %v56_v15 = vld [vmem:[#allocation0] sm:$0x1]  ;;  %v60_v16 = vld [vmem:[#allocation0 + $0x8] sm:$0x1] }
  0x89   :  { %58 = vst [vmem:[%s127_s1] sm:$0x1] %v56_v15  ;;  %71 = vst [vmem:[%s127_s1 + $0x1] sm:$0x1] %v60_v16 }

// kernel: custom_cnn_forward.3
= control target key start
LH: loop header
LB: loop body
LE: loop exit
PB: predicated region body
PF: predicated region fallthrough
CT: control target
= control target key end

     0   :  { %s1327_s21 = smov 0   ;;  %s1491_s0 = inlined_call_operand.vmem [shape: bf16[2,30,30], index: 0, kind: input, shape index: {}]   ;;  %s1492_s1 = inlined_call_operand.vmem [shape: bf16[3,30,224], index: 1, kind: input, shape index: {}]   ;;  %s1493_s2 = inlined_call_operand.vmem [shape: bf16[3,30,224], index: 2, kind: input, shape index: {}]   ;;  %s1494_s3 = inlined_call_operand.vmem [shape: f32[14,28], index: 3, kind: input, shape index: {}]   ;;  %s1495_s4 = inlined_call_operand.vmem [shape: f32[14,28], index: 4, kind: input, shape index: {}]   ;;  %s1496_s5 = inlined_call_operand.vmem [shape: f32[1,224], index: 5, kind: input, shape index: {}]   ;;  %s1497_s6 = inlined_call_operand.vmem [shape: bf16[2,14,224], index: 6, kind: output, shape index: {}]  }
   0x1 LB: > { %s1095_s22 = sadd.s32 4294967295, %s1287_s21   ;;  %p1099_p0 = scmp.ge.s32.totalorder %s1287_s21, 1  ;;  %s1287_s21 = sphi %s1327_s21, %s16_s21  }
   0x2   : > { %p212_p1 = scmp.lt.s32.totalorder %s1287_s21, 3 }
   0x4   : > { %p213_p2 = pnand %p1099_p0, %p212_p1 }
   0x5   : > { %v1243_v0 = vld [vmem:[%s1492_s1 + $0x24] ss:$8 sps:$4 sm:$0xff] (!%p213_p2)   ;;  %v1289_v2 = vmov (!%p213_p2), 0   ;;  %p242_p3 = scmp.lt.s32.totalorder (!%p213_p2), %s1095_s22, 1  ;;  %v1247_v3 = vld [vmem:[%s1492_s1 + $0x20] ss:$8 sps:$4 sm:$0xff] (!%p213_p2)  }
   0x6   : > { %216 = sbr.rel (%p213_p2) target bundleno = 513 (0x201), region = 44  ;;  %v1245_v1 = vld [vmem:[%s1493_s2 + $0x24] ss:$8 sps:$4 sm:$0xff] (!%p213_p2)   ;;  %360 = vmatprep.mubr.bf16.mxu0 (!%p213_p2), %v1289_v2  ;;  %523 = vmatprep.mubr.bf16.mxu1 (!%p213_p2), %v1289_v2  ;;  %v1248_v4 = vld [vmem:[%s1493_s2 + $0x20] ss:$8 sps:$4 sm:$0xff] (!%p213_p2)   ;;  %vm321_vm0 = vcmask (!%p213_p2), 1046528  }
   0x7   : > { %328 = vmatprep.subr.bf16.mxu0 (!%p213_p2), %v1243_v0  ;;  %491 = vmatprep.subr.bf16.mxu1 (!%p213_p2), %v1245_v1  ;;  %v1249_v5 = vld [vmem:[%s1492_s1 + $0x34] ss:$8 sps:$4 sm:$0x7f] (!%p213_p2)   ;;  %v1253_v7 = vld [vmem:[%s1492_s1 + $0x30] ss:$8 sps:$4 sm:$0x7f] (!%p213_p2)  }
   0x8   : > { %329 = vmatpush1.bf16.msra.mxu0 (!%p213_p2), %v1247_v3  ;;  %492 = vmatpush1.bf16.msra.mxu1 (!%p213_p2), %v1248_v4  ;;  %v1251_v6 = vld [vmem:[%s1493_s2 + $0x34] ss:$8 sps:$4 sm:$0x7f] (!%p213_p2)   ;;  %v1254_v8 = vld [vmem:[%s1493_s2 + $0x30] ss:$8 sps:$4 sm:$0x7f] (!%p213_p2)  }
   0x9   : > { %1114 = vmatprep.subr.msk.bf16.mxu0 (!%p213_p2), %vm321_vm0, %v1249_v5  ;;  %1132 = vmatprep.subr.msk.bf16.mxu1 (!%p213_p2), %vm321_vm0, %v1251_v6  ;;  %v323_v9 = vsel (!%p213_p2), %vm321_vm0, %v1253_v7, 0  ;;  %v486_v10 = vsel (!%p213_p2), %vm321_vm0, %v1254_v8, 0  ;;  %v1259_v11 = vld [vmem:[%s1492_s1 + $0x4] ss:$8 sps:$4 sm:$0xff] (!%p213_p2)   ;;  %vm280_vm1 = vsmask.f32 (!%p213_p2), 7424 }
   0xa   : > { %v1262_v14 = vld [vmem:[%s1493_s2 + $0x4] ss:$8 sps:$4 sm:$0xff] (!%p213_p2)   ;;  %vm314_vm2 = vcmask (!%p213_p2), 244736   ;;  %v1257_v20 = vld [vmem:[%s1492_s1] ss:$8 sps:$4 sm:$0xff] (!%p213_p2)   ;;  %v1290_v45 = vmov (!%p213_p2), 0.0  }
   0xb   : > { %v1260_v22 = vld [vmem:[%s1493_s2] ss:$8 sps:$4 sm:$0xff] (!%p213_p2)   ;;  %v1263_v23 = vld [vmem:[%s1492_s1 + $0x14] ss:$8 sps:$4 sm:$0x7f] (!%p213_p2)   ;;  %vm828_vm3 = vcmask (!%p213_p2), 1043456  }
   0xc   : > { %331 = vmatpush1.bf16.msra.mxu0 (!%p213_p2), %v323_v9  ;;  %494 = vmatpush1.bf16.msra.mxu1 (!%p213_p2), %v486_v10  ;;  %v1267_v24 = vld [vmem:[%s1492_s1 + $0x10] ss:$8 sps:$4 sm:$0x7f] (!%p213_p2)   ;;  %v1265_v27 = vld [vmem:[%s1493_s2 + $0x14] ss:$8 sps:$4 sm:$0x7f] (!%p213_p2)  }
   0xd   : > { %s1499_s22 = smov (!%p242_p3, %s1095_s22), 1  ;;  %409 = vmatprep.subr.bf16.mxu0 %v1259_v11  ;;  %568 = vmatprep.subr.bf16.mxu1 %v1262_v14  ;;  %v1268_v25 = vld [vmem:[%s1493_s2 + $0x10] ss:$8 sps:$4 sm:$0x7f]   ;;  %v404_v29 = vsel %vm321_vm0, %v1267_v24, 0  ;;  %vm1291_vm4 = vmmov 1   ;;  %v1003_v14 = vlaneseq }
   0xe   : > { %s1176_s15 = sshll.u32 %s1499_s22, 4  ;;  %v563_v30 = vsel %vm321_vm0, %v1268_v25, 0  ;;  %v1271_v31 = vld [vmem:[%s1492_s1 + $0x44] ss:$8 sps:$4 sm:$0xff]   ;;  %v1269_v34 = vld [vmem:[%s1492_s1 + $0x40] ss:$8 sps:$4 sm:$0xff]   ;;  %vm1185_vm5 = vmpackc.low %vm828_vm3, %vm1291_vm4 }
   0xf   : > { %s246_s18 = scalar_lea.vmem %s1491_s0, %s1176_s15  ;;  %v1274_v32 = vld [vmem:[%s1493_s2 + $0x44] ss:$8 sps:$4 sm:$0xff]   ;;  %v1272_v35 = vld [vmem:[%s1493_s2 + $0x40] ss:$8 sps:$4 sm:$0xff]   ;;  %vm821_vm6 = vcmask 228352   ;;  %vm1033_vm7 = vcmask 785412   ;;  %s251_s23 = scalar_lea.vmem %s1497_s6, %s1176_s15 }
  0x10   : > { %v1376_v12 = vld [vmem:[%s246_s18] sm:$0xff]   ;;  %v1378_v13 = vld [vmem:[%s246_s18 + $0x8] sm:$0x7f]   ;;  %v1279_v36 = vld [vmem:[%s1492_s1 + $0x50] ss:$8 sps:$4 sm:$0x7f]  }
  0x11   : > { %v282_v15 = vshrl.u32 %v1376_v12, 16  ;;  %v284_v16 = vshll.u32 %v1376_v12, 16  ;;  %v289_v17 = vshll.u32 %v1378_v13, 16  ;;  %v293_v28 = vshrl.u32 %v1378_v13, 16  ;;  %v819_v10 = vld [vmem:[%s1494_s3] sm:$0xff]  ;;  %vm1034_vm8 = vmor %vm1033_vm7, %vm828_vm3 }
  0x12   : > { %v1280_v37 = vld [vmem:[%s1493_s2 + $0x50] ss:$8 sps:$4 sm:$0x7f]   ;;  %v1275_v38 = vld [vmem:[%s1492_s1 + $0x54] ss:$8 sps:$4 sm:$0x7f]  }
  0x13   : > { %v286_v18 = vrot.slane %v284_v16, 1  ;;  %v291_v19 = vrot.slane %v289_v17, 1  ;;  %v1277_v39 = vld [vmem:[%s1493_s2 + $0x54] ss:$8 sps:$4 sm:$0x7f]   ;;  %v655_v40 = vsel %vm321_vm0, %v1279_v36, 0 }
  0x14   : > { %v745_v41 = vsel %vm321_vm0, %v1280_v37, 0  ;;  %v627_v42 = vrot.slane %v1376_v12, 1  ;;  %v628_v43 = vrot.slane %v1378_v13, 1  ;;  %v912_v11 = vld [vmem:[%s1495_s4] sm:$0xff]  ;;  %vm1036_vm9 = vcmask 1042432  }
  0x15   : > { %v287_v21 = vor.u32 %v286_v18, %v282_v15  ;;  %v295_v33 = vor.u32 %v293_v28, %v291_v19  ;;  %v1004_v15 = vshrl.u32 %v1003_v14, 7  ;;  %v1001_v17 = vld [vmem:[%s1496_s5] sm:$0x3]  ;;  %vm1037_vm10 = vcmask 784388  }
  0x16   : > { %v629_v44 = vsel %vm321_vm0, %v627_v42, %v628_v43  ;;  %vm1038_vm11 = vmor %vm1037_vm10, %vm1036_vm9 }
  0x17   : > { %v292_v26 = vsel %vm280_vm1, %v287_v21, %v291_v19  ;;  %v1005_v16 = vsub.s32 0, %v1004_v15  ;;  %v1009_v18 = vsub.s32 1, %v1004_v15 }
  0x18   : > { %1115 = vmatmul.mubr.msk.bf16.vlgmr.msra.gmra.mrb[0].mxu0 %vm314_vm2, %v292_v26  ;;  %1133 = vmatmul.mubr.msk.bf16.vlgmr.msra.gmra.mrb[0].mxu1 %vm314_vm2, %v292_v26 }
  0x19   : > { %410 = vmatpush1.bf16.msra.mxu0 %v1257_v20  ;;  %569 = vmatpush1.bf16.msra.mxu1 %v1260_v22  ;;  %v1006_v19 = vrot.slane %v1001_v17, %v1005_v16  ;;  %v1010_v22 = vrot.slane %v1001_v17, %v1009_v18 }
  0x1a   : > { %370 = vmatprep.mubr.bf16.mxu0 %v1289_v2  ;;  %533 = vmatprep.mubr.bf16.mxu1 %v1289_v2 }
  0x1b   : > { %1121 = vmatprep.subr.msk.bf16.mxu0 %vm321_vm0, %v1263_v23  ;;  %1139 = vmatprep.subr.msk.bf16.mxu1 %vm321_vm0, %v1265_v27 }
  0x1d   : > { %412 = vmatpush1.bf16.msra.mxu0 %v404_v29  ;;  %571 = vmatpush1.bf16.msra.mxu1 %v563_v30 }
  0x1e   : > { %660 = vmatprep.subr.bf16.mxu0 %v1271_v31  ;;  %750 = vmatprep.subr.bf16.mxu1 %v1274_v32 }
  0x20   : > { %1116 = vmatmul.mubr.msk.bf16.gmra.mrb[4].mxu0 %vm314_vm2, %v295_v33  ;;  %1134 = vmatmul.mubr.msk.bf16.gmra.mrb[4].mxu1 %vm314_vm2, %v295_v33 }
  0x21   : > { %441 = vmatprep.mubr.bf16.mxu0 %v1289_v2  ;;  %600 = vmatprep.mubr.bf16.mxu1 %v1289_v2 }
  0x28   : > { %1122 = vmatmul.mubr.msk.bf16.vlgmr.msra.gmra.mrb[0].mxu0 %vm314_vm2, %v1376_v12  ;;  %1140 = vmatmul.mubr.msk.bf16.vlgmr.msra.gmra.mrb[0].mxu1 %vm314_vm2, %v1376_v12  ;;  %v820_v12 = vld [vmem:[%s1494_s3 + $0x8] sm:$0x3f] }
  0x29   : > { %661 = vmatpush1.bf16.msra.mxu0 %v1269_v34  ;;  %751 = vmatpush1.bf16.msra.mxu1 %v1272_v35 }
  0x2a   : > { %451 = vmatprep.mubr.bf16.mxu0 %v1289_v2  ;;  %610 = vmatprep.mubr.bf16.mxu1 %v1289_v2 }
  0x2b   : > { %1150 = vmatprep.subr.msk.bf16.mxu0 %vm321_vm0, %v1275_v38  ;;  %1161 = vmatprep.subr.msk.bf16.mxu1 %vm321_vm0, %v1277_v39 }
  0x2d   : > { %663 = vmatpush1.bf16.msra.mxu0 %v655_v40  ;;  %753 = vmatpush1.bf16.msra.mxu1 %v745_v41 }
  0x30   : > { %1123 = vmatmul.mubr.msk.bf16.gmra.mrb[4].mxu0 %vm314_vm2, %v1378_v13  ;;  %1141 = vmatmul.mubr.msk.bf16.gmra.mrb[4].mxu1 %vm314_vm2, %v1378_v13  ;;  %v913_v13 = vld [vmem:[%s1495_s4 + $0x8] sm:$0x3f] }
  0x31   : > { %692 = vmatprep.mubr.bf16.mxu0 %v1289_v2  ;;  %782 = vmatprep.mubr.bf16.mxu1 %v1289_v2 }
  0x38   : > { %1151 = vmatmul.mubr.msk.bf16.vlgmr.msra.gmra.mrb[0].mxu0 %vm314_vm2, %v629_v44  ;;  %1162 = vmatmul.mubr.msk.bf16.vlgmr.msra.gmra.mrb[0].mxu1 %vm314_vm2, %v629_v44 }
  0x39   : > { %702 = vmatprep.mubr.bf16.mxu0 %v1289_v2  ;;  %792 = vmatprep.mubr.bf16.mxu1 %v1289_v2 }
  0x40   : > { %1152 = vmatmul.mubr.msk.bf16.gmra.mrb[4].mxu0 %vm314_vm2, %v628_v43  ;;  %1163 = vmatmul.mubr.msk.bf16.gmra.mrb[4].mxu1 %vm314_vm2, %v628_v43 }
  0x41   : > { %899 = vmatprep.mubr.f32.mxu0 %v1290_v45  ;;  %984 = vmatprep.mubr.f32.mxu1 %v1290_v45 }
 0x10b   : > { %v694_v46 = vpop.f32.mrb[0].mxu0  ;;  %v784_v47 = vpop.f32.mrb[0].mxu1 }
 0x10c   : > { %v811_v48 = vmax.f32 %v694_v46, %v784_v47  ;;  %v696_v49 = vpop.f32.mrb[1].mxu0  ;;  %v786_v50 = vpop.f32.mrb[1].mxu1 }
 0x10d   : > { %v812_v51 = vmax.f32 %v696_v49, %v786_v50  ;;  %v698_v52 = vpop.f32.mrb[2].mxu0  ;;  %v788_v53 = vpop.f32.mrb[2].mxu1 }
 0x10e   : > { %v813_v54 = vmax.f32 %v698_v52, %v788_v53  ;;  %v700_v55 = vpop.f32.mrb[3].mxu0  ;;  %v790_v56 = vpop.f32.mrb[3].mxu1 }
 0x10f   : > { %v814_v57 = vmax.f32 %v700_v55, %v790_v56 }
 0x110   : > { %v1182_v58 = vpack.c.bf16 %v813_v54, %v811_v48 }
 0x111   : > { %v1180_v59 = vpack.c.bf16 %v814_v57, %v812_v51 }
 0x113   : > { %v704_v60 = vpop.f32.mrb[4].mxu0  ;;  %v794_v61 = vpop.f32.mrb[4].mxu1  ;;  %1181 = vmatprep.subr.bf16.mxu0 %v1180_v59  ;;  %1191 = vmatprep.subr.bf16.mxu1 %v1180_v59 }
 0x114   : > { %v815_v62 = vmax.f32 %v704_v60, %v794_v61  ;;  %v706_v63 = vpop.f32.mrb[5].mxu0  ;;  %v796_v0 = vpop.f32.mrb[5].mxu1  ;;  %1183 = vmatpush1.bf16.msra.mxu0 %v1182_v58  ;;  %1193 = vmatpush1.bf16.msra.mxu1 %v1182_v58 }
 0x115   : > { %v816_v1 = vmax.f32 %v706_v63, %v796_v0  ;;  %v708_v2 = vpop.f32.mrb[6].mxu0  ;;  %v798_v3 = vpop.f32.mrb[6].mxu1 }
 0x116   : > { %v817_v4 = vmax.f32 %v708_v2, %v798_v3  ;;  %v710_v5 = vpop.f32.mrb[7].mxu0  ;;  %v800_v6 = vpop.f32.mrb[7].mxu1 }
 0x117   : > { %v818_v7 = vmax.f32 %v710_v5, %v800_v6 }
 0x118   : > { %v1187_v8 = vpack.c.bf16 %v817_v4, %v815_v62 }
 0x119   : > { %v1184_v9 = vpack.c.bf16 %v818_v7, %v816_v1 }
 0x11b   : > { %1186 = vmatprep.subr.msk.bf16.mxu0 %vm1185_vm5, %v1184_v9  ;;  %1196 = vmatprep.subr.msk.bf16.mxu1 %vm1185_vm5, %v1184_v9 }
 0x11c   : > { %1189 = vmatpush1.bf16.msk.msra.mxu0 %vm1185_vm5, %v1187_v8  ;;  %1199 = vmatpush1.bf16.msk.msra.mxu1 %vm1185_vm5, %v1187_v8 }
 0x11f   : > { %1166 = vmatmul.mubr.msk.f32.vlgmr.msra.gmra.mrb[8].mxu0 %vm821_vm6, %v819_v10  ;;  %1170 = vmatmul.mubr.msk.f32.vlgmr.msra.gmra.mrb[8].mxu1 %vm821_vm6, %v912_v11 }
 0x120   : > { %905 = vmatprep.mubr.f32.mxu0 %v1290_v45  ;;  %990 = vmatprep.mubr.f32.mxu1 %v1290_v45 }
 0x123   : > { %1167 = vmatmul.mubr.msk.f32.gmra.mrb[10].mxu0 %vm821_vm6, %v820_v12  ;;  %1171 = vmatmul.mubr.msk.f32.gmra.mrb[10].mxu1 %vm821_vm6, %v913_v13 }
 0x1f2   : > { %v901_v20 = vpop.f32.mrb[8].mxu0  ;;  %v986_v21 = vpop.f32.mrb[8].mxu1 }
 0x1f3   : > { %v997_v23 = vmax.f32 %v901_v20, %v986_v21  ;;  %v903_v24 = vpop.f32.mrb[9].mxu0  ;;  %v988_v25 = vpop.f32.mrb[9].mxu1 }
 0x1f4   : > { %v998_v26 = vmax.f32 %v903_v24, %v988_v25 }
 0x1f5   : > { %v1013_v27 = vadd.f32 %v1006_v19, %v997_v23 }
 0x1f6   : > { %v1014_v28 = vadd.f32 %v1010_v22, %v998_v26  ;;  %v907_v29 = vpop.f32.mrb[10].mxu0  ;;  %v992_v30 = vpop.f32.mrb[10].mxu1 }
 0x1f7   : > { %v1017_v31 = vmax.f32 %v1013_v27, 0.0  ;;  %v999_v32 = vmax.f32 %v907_v29, %v992_v30  ;;  %v909_v33 = vpop.f32.mrb[11].mxu0  ;;  %v994_v34 = vpop.f32.mrb[11].mxu1 }
 0x1f8   : > { %v1018_v35 = vmax.f32 %v1014_v28, 0.0  ;;  %v1000_v36 = vmax.f32 %v909_v33, %v994_v34 }
 0x1f9   : > { %v1015_v37 = vadd.f32 %v1006_v19, %v999_v32 }
 0x1fa   : > { %v1178_v38 = vpack.c.bf16 %v1018_v35, %v1017_v31  ;;  %v1016_v39 = vadd.f32 %v1010_v22, %v1000_v36 }
 0x1fb   : > { %v1019_v40 = vmax.f32 %v1015_v37, 0.0 }
 0x1fc   : > { %1035 = vst.msk [vmem:[%s251_s23] sm:$0xff] %vm1034_vm8, %v1178_v38  ;;  %v1020_v41 = vmax.f32 %v1016_v39, 0.0 }
 0x1fe   : > { %v1179_v42 = vpack.c.bf16 %v1020_v41, %v1019_v40 }
 0x200   : > { %1039 = vst.msk [vmem:[%s251_s23 + $0x8] sm:$0x77] %vm1038_vm11, %v1179_v42 }
 0x201 PF: > { %s16_s21 = sadd.s32 1, %s1287_s21  }
 0x202   : > { %p13_p4 = scmp.ge.s32.totalorder %s16_s21, 4  }
 0x204   :  { %15 = sbr.rel (!%p13_p4) target bundleno = 1 (0x1), region = 78 }

// kernel: tile.18
= control target key start
LH: loop header
LB: loop body
LE: loop exit
PB: predicated region body
PF: predicated region fallthrough
CT: control target
= control target key end

     0   :  { %s22_s0 = inlined_call_operand.vmem [shape: f32[32], index: 0, kind: input, shape index: {}]   ;;  %s23_s1 = inlined_call_operand.vmem [shape: f32[7,32], index: 1, kind: output, shape index: {}]  }
   0x1   :  { %v4_v0 = vld [vmem:[%s22_s0] ss:$0 sm:$0xff] }
   0x2   :  { %5 = vst [vmem:[%s23_s1] sm:$0xff] %v4_v0 }

// kernel: tile.19
= control target key start
LH: loop header
LB: loop body
LE: loop exit
PB: predicated region body
PF: predicated region fallthrough
CT: control target
= control target key end

     0   :  { %s13_s8 = smov 3  ;;  %s44_s9 = smov 96   ;;  %vm4_vm0 = vcmask 261120   ;;  %vm10_vm1 = vcmask 1048320   ;;  %vm17_vm2 = vcmask 785920   ;;  %vm24_vm3 = vcmask 523520   ;;  %s75_s0 = inlined_call_operand.vmem [shape: f32[7,32], index: 0, kind: input, shape index: {}]   ;;  %s76_s1 = inlined_call_operand.vmem [shape: f32[1,224], index: 1, kind: output, shape index: {}]  }
   0x1   :  { %v37_v0 = vld [vmem:[%s75_s0 + $0x3] sm:$0x1]   ;;  %s20_s10 = smov 3  ;;  %v38_v1 = vld [vmem:[%s75_s0 + $0x2] ss:$4 sm:%s13_s8]   ;;  %s2_s15 = smov 3 }
   0x2   :  { %8 = vrot.lane.b32.xlu0 %v37_v0, %s44_s9  ;;  %v39_v2 = vld [vmem:[%s75_s0 + $0x1] ss:$4 sm:%s20_s10]   ;;  %s45_s16 = smov 32  }
   0x3   :  { %22 = vrot.lane.b32.xlu1 %v39_v2, %s45_s16  ;;  %v3_v3 = vld [vmem:[%s75_s0] ss:$4 sm:%s2_s15]   ;;  %s46_s0 = smov 64  }
   0x4   :  { %5 = vst.msk [vmem:[#allocation0] ss:$8 sm:$0x3] %vm4_vm0, %v3_v3  }
   0x6   :  { %15 = vrot.lane.b32.xlu0 %v38_v1, %s46_s0 }
  0x74   :  { %v9_v4 = vpop.permute.xlu0 %8  }
  0x75   :  { %11 = vst.msk [vmem:[#allocation0] sm:$0x1] %vm10_vm1, %v9_v4   ;;  %v23_v5 = vpop.permute.xlu1 %22  }
  0x78   :  { %v16_v6 = vpop.permute.xlu0 %15  }
  0x79   :  { %18 = vst.msk [vmem:[#allocation0] ss:$8 sm:$0x3] %vm17_vm2, %v16_v6  }
  0x7a   :  { %25 = vst.msk [vmem:[#allocation0] ss:$8 sm:$0x3] %vm24_vm3, %v23_v5  }
  0x81   :  { %v29_v7 = vld [vmem:[#allocation0] sm:$0x1]  ;;  %v33_v8 = vld [vmem:[#allocation0 + $0x8] sm:$0x1] }
  0x82   :  { %31 = vst [vmem:[%s76_s1] sm:$0x1] %v29_v7  ;;  %40 = vst [vmem:[%s76_s1 + $0x1] sm:$0x1] %v33_v8 }

// kernel: custom_cnn_forward.4
= control target key start
LH: loop header
LB: loop body
LE: loop exit
PB: predicated region body
PF: predicated region fallthrough
CT: control target
= control target key end

     0   :  { %s2676_s21 = smov 0   ;;  %s3300_s0 = inlined_call_operand.vmem [shape: bf16[2,16,256], index: 0, kind: input, shape index: {}]   ;;  %s3301_s1 = inlined_call_operand.vmem [shape: bf16[3,256,224], index: 1, kind: input, shape index: {}]   ;;  %s3302_s2 = inlined_call_operand.vmem [shape: bf16[3,256,224], index: 2, kind: input, shape index: {}]   ;;  %s3303_s3 = inlined_call_operand.vmem [shape: f32[7,14], index: 3, kind: input, shape index: {}]   ;;  %s3304_s4 = inlined_call_operand.vmem [shape: f32[7,14], index: 4, kind: input, shape index: {}]   ;;  %s3305_s5 = inlined_call_operand.vmem [shape: f32[1,224], index: 5, kind: input, shape index: {}]   ;;  %s3306_s6 = inlined_call_operand.vmem [shape: bf16[2,7,224], index: 6, kind: output, shape index: {}]  }
   0x1 LB: > { %s1959_s22 = sadd.s32 4294967295, %s2637_s21   ;;  %p1963_p0 = scmp.ge.s32.totalorder %s2637_s21, 1  ;;  %s2637_s21 = sphi %s2676_s21, %s16_s21  }
   0x2   : > { %p212_p1 = scmp.lt.s32.totalorder %s2637_s21, 3 }
   0x4   : > { %p213_p2 = pnand %p1963_p0, %p212_p1 }
   0x5   : > { %v2340_v0 = vld [vmem:[%s3301_s1 + $0x104] ss:$8 sps:$4 sm:$0xff] (!%p213_p2)   ;;  %v2344_v2 = vld [vmem:[%s3301_s1 + $0x100] ss:$8 sps:$4 sm:$0xff] (!%p213_p2)   ;;  %v2346_v4 = vld [vmem:[%s3301_s1 + $0x114] ss:$8 sps:$4 sm:$0xff] (!%p213_p2)  }
   0x6   : > { %216 = sbr.rel (%p213_p2) target bundleno = 645 (0x285), region = 44  ;;  %v2342_v1 = vld [vmem:[%s3302_s2 + $0x104] ss:$8 sps:$4 sm:$0xff] (!%p213_p2)   ;;  %535 = vmatprep.subr.bf16.mxu0 (!%p213_p2), %v2340_v0  ;;  %v2345_v3 = vld [vmem:[%s3302_s2 + $0x100] ss:$8 sps:$4 sm:$0xff] (!%p213_p2)   ;;  %p242_p3 = scmp.lt.s32.totalorder (!%p213_p2), %s1959_s22, 1 }
   0x7   : > { %976 = vmatprep.subr.bf16.mxu1 (!%p213_p2), %v2342_v1  ;;  %536 = vmatpush1.bf16.msra.mxu0 (!%p213_p2), %v2344_v2  ;;  %v2348_v5 = vld [vmem:[%s3302_s2 + $0x114] ss:$8 sps:$4 sm:$0xff] (!%p213_p2)   ;;  %v2350_v6 = vld [vmem:[%s3301_s1 + $0x110] ss:$8 sps:$4 sm:$0xff] (!%p213_p2)   ;;  %v2352_v8 = vld [vmem:[%s3301_s1 + $0x124] ss:$8 sps:$4 sm:$0xff] (!%p213_p2)  }
   0x8   : > { %977 = vmatpush1.bf16.msra.mxu1 (!%p213_p2), %v2345_v3  ;;  %537 = vmatprep.subr.bf16.mxu0 (!%p213_p2), %v2346_v4  ;;  %v2351_v7 = vld [vmem:[%s3302_s2 + $0x110] ss:$8 sps:$4 sm:$0xff] (!%p213_p2)   ;;  %v2354_v9 = vld [vmem:[%s3302_s2 + $0x124] ss:$8 sps:$4 sm:$0xff] (!%p213_p2)   ;;  %v2356_v10 = vld [vmem:[%s3301_s1 + $0x120] ss:$8 sps:$4 sm:$0xff] (!%p213_p2)  }
   0x9   : > { %978 = vmatprep.subr.bf16.mxu1 (!%p213_p2), %v2348_v5  ;;  %v2357_v11 = vld [vmem:[%s3302_s2 + $0x120] ss:$8 sps:$4 sm:$0xff] (!%p213_p2)   ;;  %v2358_v12 = vld [vmem:[%s3301_s1 + $0x134] ss:$8 sps:$4 sm:$0xff] (!%p213_p2)   ;;  %v2362_v14 = vld [vmem:[%s3301_s1 + $0x130] ss:$8 sps:$4 sm:$0xff] (!%p213_p2)  }
   0xa   : > { %v2360_v13 = vld [vmem:[%s3302_s2 + $0x134] ss:$8 sps:$4 sm:$0xff] (!%p213_p2)   ;;  %v2363_v15 = vld [vmem:[%s3302_s2 + $0x130] ss:$8 sps:$4 sm:$0xff] (!%p213_p2)   ;;  %v2364_v16 = vld [vmem:[%s3301_s1 + $0x144] ss:$8 sps:$4 sm:$0xff] (!%p213_p2)  }
   0xb   : > { %538 = vmatpush1.bf16.msra.mxu0 (!%p213_p2), %v2350_v6  ;;  %v2366_v17 = vld [vmem:[%s3302_s2 + $0x144] ss:$8 sps:$4 sm:$0xff] (!%p213_p2)   ;;  %v2368_v18 = vld [vmem:[%s3301_s1 + $0x140] ss:$8 sps:$4 sm:$0xff] (!%p213_p2)   ;;  %v2370_v20 = vld [vmem:[%s3301_s1 + $0x154] ss:$8 sps:$4 sm:$0xff] (!%p213_p2)  }
   0xc   : > { %979 = vmatpush1.bf16.msra.mxu1 (!%p213_p2), %v2351_v7  ;;  %539 = vmatprep.subr.bf16.mxu0 (!%p213_p2), %v2352_v8  ;;  %v2369_v19 = vld [vmem:[%s3302_s2 + $0x140] ss:$8 sps:$4 sm:$0xff] (!%p213_p2)   ;;  %v2372_v21 = vld [vmem:[%s3302_s2 + $0x154] ss:$8 sps:$4 sm:$0xff] (!%p213_p2)   ;;  %v2374_v22 = vld [vmem:[%s3301_s1 + $0x150] ss:$8 sps:$4 sm:$0xff] (!%p213_p2)  }
   0xd   : > { %980 = vmatprep.subr.bf16.mxu1 %v2354_v9  ;;  %v2375_v23 = vld [vmem:[%s3302_s2 + $0x150] ss:$8 sps:$4 sm:$0xff]   ;;  %v2376_v24 = vld [vmem:[%s3301_s1 + $0x164] ss:$8 sps:$4 sm:$0xff]   ;;  %v2380_v26 = vld [vmem:[%s3301_s1 + $0x160] ss:$8 sps:$4 sm:$0xff]  }
   0xe   : > { %v2378_v25 = vld [vmem:[%s3302_s2 + $0x164] ss:$8 sps:$4 sm:$0xff]   ;;  %v2381_v27 = vld [vmem:[%s3302_s2 + $0x160] ss:$8 sps:$4 sm:$0xff]   ;;  %v2382_v28 = vld [vmem:[%s3301_s1 + $0x174] ss:$8 sps:$4 sm:$0xff]  }
   0xf   : > { %540 = vmatpush1.bf16.msra.mxu0 %v2356_v10  ;;  %v2384_v29 = vld [vmem:[%s3302_s2 + $0x174] ss:$8 sps:$4 sm:$0xff]   ;;  %v2386_v30 = vld [vmem:[%s3301_s1 + $0x170] ss:$8 sps:$4 sm:$0xff]   ;;  %v2388_v32 = vld [vmem:[%s3301_s1 + $0x184] ss:$8 sps:$4 sm:$0xff]  }
  0x10   : > { %981 = vmatpush1.bf16.msra.mxu1 %v2357_v11  ;;  %541 = vmatprep.subr.bf16.mxu0 %v2358_v12  ;;  %v2387_v31 = vld [vmem:[%s3302_s2 + $0x170] ss:$8 sps:$4 sm:$0xff]   ;;  %v2390_v33 = vld [vmem:[%s3302_s2 + $0x184] ss:$8 sps:$4 sm:$0xff]   ;;  %v2392_v34 = vld [vmem:[%s3301_s1 + $0x180] ss:$8 sps:$4 sm:$0xff]  }
  0x11   : > { %982 = vmatprep.subr.bf16.mxu1 %v2360_v13  ;;  %v2393_v35 = vld [vmem:[%s3302_s2 + $0x180] ss:$8 sps:$4 sm:$0xff]   ;;  %v2394_v36 = vld [vmem:[%s3301_s1 + $0x194] ss:$8 sps:$4 sm:$0xff]   ;;  %s3308_s22 = smov (!%p242_p3, %s1959_s22), 1  ;;  %vm1715_vm0 = vcmask 1045504  }
  0x12   : > { %v2396_v37 = vld [vmem:[%s3302_s2 + $0x194] ss:$8 sps:$4 sm:$0xff]   ;;  %v2398_v38 = vld [vmem:[%s3301_s1 + $0x190] ss:$8 sps:$4 sm:$0xff]   ;;  %v2400_v40 = vld [vmem:[%s3301_s1 + $0x1a4] ss:$8 sps:$4 sm:$0xff]  }
  0x13   : > { %542 = vmatpush1.bf16.msra.mxu0 %v2362_v14  ;;  %v2399_v39 = vld [vmem:[%s3302_s2 + $0x190] ss:$8 sps:$4 sm:$0xff]   ;;  %v2402_v41 = vld [vmem:[%s3302_s2 + $0x1a4] ss:$8 sps:$4 sm:$0xff]   ;;  %s2299_s17 = sshll.u32 %s3308_s22, 4  ;;  %vm2640_vm1 = vmmov 1  }
  0x14   : > { %983 = vmatpush1.bf16.msra.mxu1 %v2363_v15  ;;  %543 = vmatprep.subr.bf16.mxu0 %v2364_v16  ;;  %v2404_v42 = vld [vmem:[%s3301_s1 + $0x1a0] ss:$8 sps:$4 sm:$0xff]   ;;  %v2406_v44 = vld [vmem:[%s3301_s1 + $0x1b4] ss:$8 sps:$4 sm:$0xff]   ;;  %s246_s28 = scalar_lea.vmem %s3300_s0, %s2299_s17  ;;  %v2410_v46 = vld [vmem:[%s3301_s1 + $0x1b0] ss:$8 sps:$4 sm:$0xff]  }
  0x15   : > { %984 = vmatprep.subr.bf16.mxu1 %v2366_v17  ;;  %v2405_v43 = vld [vmem:[%s3302_s2 + $0x1a0] ss:$8 sps:$4 sm:$0xff]   ;;  %v2408_v45 = vld [vmem:[%s3302_s2 + $0x1b4] ss:$8 sps:$4 sm:$0xff]   ;;  %v2411_v47 = vld [vmem:[%s3302_s2 + $0x1b0] ss:$8 sps:$4 sm:$0xff]  }
  0x16   : > { %v2838_v48 = vld [vmem:[%s246_s28 + $0x4] ss:$8 sps:$4 sm:$0xff]   ;;  %v2416_v53 = vld [vmem:[%s3301_s1 + $0x1c0] ss:$8 sps:$4 sm:$0xff]   ;;  %v2418_v56 = vld [vmem:[%s3301_s1 + $0x1d4] ss:$8 sps:$4 sm:$0xff]  }
  0x17   : > { %544 = vmatpush1.bf16.msra.mxu0 %v2368_v18  ;;  %v2412_v49 = vld [vmem:[%s3301_s1 + $0x1c4] ss:$8 sps:$4 sm:$0xff]   ;;  %v367_v51 = vshrl.u32 %v2838_v48, 16  ;;  %v369_v52 = vshll.u32 %v2838_v48, 16  ;;  %v2417_v55 = vld [vmem:[%s3302_s2 + $0x1c0] ss:$8 sps:$4 sm:$0xff]   ;;  %vm2303_vm2 = vmpackc.low %vm1715_vm0, %vm2640_vm1 }
  0x18   : > { %985 = vmatpush1.bf16.msra.mxu1 %v2369_v19  ;;  %545 = vmatprep.subr.bf16.mxu0 %v2370_v20  ;;  %v2414_v50 = vld [vmem:[%s3302_s2 + $0x1c4] ss:$8 sps:$4 sm:$0xff]   ;;  %v2420_v57 = vld [vmem:[%s3302_s2 + $0x1d4] ss:$8 sps:$4 sm:$0xff]   ;;  %v2422_v59 = vld [vmem:[%s3301_s1 + $0x1d0] ss:$8 sps:$4 sm:$0xff]  }
  0x19   : > { %986 = vmatprep.subr.bf16.mxu1 %v2372_v21  ;;  %v371_v54 = vrot.slane %v369_v52, 1  ;;  %v2863_v60 = vld [vmem:[%s246_s28] ss:$8 sps:$4 sm:$0xff]   ;;  %v2423_v61 = vld [vmem:[%s3302_s2 + $0x1d0] ss:$8 sps:$4 sm:$0xff]   ;;  %vm1711_vm3 = vcmask 113664  }
  0x1a   : > { %v2424_v62 = vld [vmem:[%s3301_s1 + $0x1e4] ss:$8 sps:$4 sm:$0xff]   ;;  %v2428_v0 = vld [vmem:[%s3301_s1 + $0x1e0] ss:$8 sps:$4 sm:$0xff]   ;;  %v362_v1 = vshll.u32 %v2863_v60, 16  ;;  %v360_v6 = vshrl.u32 %v2863_v60, 16 }
  0x1b   : > { %546 = vmatpush1.bf16.msra.mxu0 %v2374_v22  ;;  %v372_v58 = vor.u32 %v371_v54, %v367_v51  ;;  %v2426_v63 = vld [vmem:[%s3302_s2 + $0x1e4] ss:$8 sps:$4 sm:$0xff]   ;;  %v2429_v2 = vld [vmem:[%s3302_s2 + $0x1e0] ss:$8 sps:$4 sm:$0xff]   ;;  %v2430_v3 = vld [vmem:[%s3301_s1 + $0x1f4] ss:$8 sps:$4 sm:$0xff]  }
  0x1c   : > { %987 = vmatpush1.bf16.msra.mxu1 %v2375_v23  ;;  %547 = vmatprep.subr.bf16.mxu0 %v2376_v24  ;;  %v2432_v4 = vld [vmem:[%s3302_s2 + $0x1f4] ss:$8 sps:$4 sm:$0xff]   ;;  %v2434_v5 = vld [vmem:[%s3301_s1 + $0x1f0] ss:$8 sps:$4 sm:$0xff]   ;;  %v364_v7 = vrot.slane %v362_v1, 1  ;;  %vm1894_vm4 = vcmask 1043456  }
  0x1d   : > { %988 = vmatprep.subr.bf16.mxu1 %v2378_v25  ;;  %567 = vmatprep.mubr.bf16.mxu0 %v372_v58  ;;  %v2435_v8 = vld [vmem:[%s3302_s2 + $0x1f0] ss:$8 sps:$4 sm:$0xff]   ;;  %v2441_v9 = vld [vmem:[%s3301_s1 + $0x4] ss:$8 sps:$4 sm:$0xff]   ;;  %v2439_v11 = vld [vmem:[%s3301_s1] ss:$8 sps:$4 sm:$0xff]  }
  0x1e   : > { %1008 = vmatprep.mubr.bf16.mxu1 %v372_v58  ;;  %v2444_v10 = vld [vmem:[%s3302_s2 + $0x4] ss:$8 sps:$4 sm:$0xff]   ;;  %v365_v12 = vor.u32 %v364_v7, %v360_v6  ;;  %v2442_v13 = vld [vmem:[%s3302_s2] ss:$8 sps:$4 sm:$0xff]   ;;  %v2447_v14 = vld [vmem:[%s3301_s1 + $0x14] ss:$8 sps:$4 sm:$0xff]  }
  0x1f   : > { %548 = vmatpush1.bf16.msra.mxu0 %v2380_v26  ;;  %v2450_v15 = vld [vmem:[%s3302_s2 + $0x14] ss:$8 sps:$4 sm:$0xff]   ;;  %v2445_v16 = vld [vmem:[%s3301_s1 + $0x10] ss:$8 sps:$4 sm:$0xff]   ;;  %v2453_v18 = vld [vmem:[%s3301_s1 + $0x24] ss:$8 sps:$4 sm:$0xff]  }
  0x20   : > { %989 = vmatpush1.bf16.msra.mxu1 %v2381_v27  ;;  %549 = vmatprep.subr.bf16.mxu0 %v2382_v28  ;;  %v2448_v17 = vld [vmem:[%s3302_s2 + $0x10] ss:$8 sps:$4 sm:$0xff]   ;;  %v2456_v19 = vld [vmem:[%s3302_s2 + $0x24] ss:$8 sps:$4 sm:$0xff]   ;;  %v2451_v20 = vld [vmem:[%s3301_s1 + $0x20] ss:$8 sps:$4 sm:$0xff]  }
  0x21   : > { %990 = vmatprep.subr.bf16.mxu1 %v2384_v29  ;;  %v2454_v21 = vld [vmem:[%s3302_s2 + $0x20] ss:$8 sps:$4 sm:$0xff]   ;;  %v2459_v22 = vld [vmem:[%s3301_s1 + $0x34] ss:$8 sps:$4 sm:$0xff]   ;;  %v2457_v24 = vld [vmem:[%s3301_s1 + $0x30] ss:$8 sps:$4 sm:$0xff]  }
  0x22   : > { %v2462_v23 = vld [vmem:[%s3302_s2 + $0x34] ss:$8 sps:$4 sm:$0xff]   ;;  %v2460_v25 = vld [vmem:[%s3302_s2 + $0x30] ss:$8 sps:$4 sm:$0xff]   ;;  %v2465_v26 = vld [vmem:[%s3301_s1 + $0x44] ss:$8 sps:$4 sm:$0xff]  }
  0x23   : > { %550 = vmatpush1.bf16.msra.mxu0 %v2386_v30  ;;  %v2468_v27 = vld [vmem:[%s3302_s2 + $0x44] ss:$8 sps:$4 sm:$0xff]   ;;  %v2463_v28 = vld [vmem:[%s3301_s1 + $0x40] ss:$8 sps:$4 sm:$0xff]   ;;  %v2471_v30 = vld [vmem:[%s3301_s1 + $0x54] ss:$8 sps:$4 sm:$0xff]  }
  0x24   : > { %991 = vmatpush1.bf16.msra.mxu1 %v2387_v31  ;;  %551 = vmatprep.subr.bf16.mxu0 %v2388_v32  ;;  %v2466_v29 = vld [vmem:[%s3302_s2 + $0x40] ss:$8 sps:$4 sm:$0xff]   ;;  %v2474_v31 = vld [vmem:[%s3302_s2 + $0x54] ss:$8 sps:$4 sm:$0xff]   ;;  %v2469_v32 = vld [vmem:[%s3301_s1 + $0x50] ss:$8 sps:$4 sm:$0xff]  }
  0x25   : > { %992 = vmatprep.subr.bf16.mxu1 %v2390_v33  ;;  %v2472_v33 = vld [vmem:[%s3302_s2 + $0x50] ss:$8 sps:$4 sm:$0xff]   ;;  %v2501_v51 = vld [vmem:[%s3301_s1 + $0xa4] ss:$8 sps:$4 sm:$0xff]   ;;  %v2502_v54 = vld [vmem:[%s3302_s2 + $0xa0] ss:$8 sps:$4 sm:$0xff]  }
  0x26   : > { %v2504_v52 = vld [vmem:[%s3302_s2 + $0xa4] ss:$8 sps:$4 sm:$0xff]   ;;  %v2508_v58 = vld [vmem:[%s3302_s2 + $0xb0] ss:$8 sps:$4 sm:$0xff]   ;;  %v2522_v1 = vld [vmem:[%s3302_s2 + $0xd4] ss:$8 sps:$4 sm:$0xff]  }
  0x27   : > { %552 = vmatpush1.bf16.msra.mxu0 %v2392_v34  ;;  %v2477_v34 = vld [vmem:[%s3301_s1 + $0x64] ss:$8 sps:$4 sm:$0xff]   ;;  %v2523_v6 = vld [vmem:[%s3301_s1 + $0xe0] ss:$8 sps:$4 sm:$0xff]   ;;  %vm1895_vm5 = vsmask.f32 3328 }
  0x28   : > { %993 = vmatpush1.bf16.msra.mxu1 %v2393_v35  ;;  %553 = vmatprep.subr.bf16.mxu0 %v2394_v36  ;;  %v2480_v35 = vld [vmem:[%s3302_s2 + $0x64] ss:$8 sps:$4 sm:$0xff]   ;;  %v2475_v36 = vld [vmem:[%s3301_s1 + $0x60] ss:$8 sps:$4 sm:$0xff]   ;;  %s2300_s19 = sshll.u32 %s3308_s22, 3  ;;  %vm1897_vm6 = vcmask 785412   ;;  %vm1896_vm8 = vmand %vm1894_vm4, %vm1895_vm5 }
  0x29   : > { %994 = vmatprep.subr.bf16.mxu1 %v2396_v37  ;;  %v2478_v37 = vld [vmem:[%s3302_s2 + $0x60] ss:$8 sps:$4 sm:$0xff]   ;;  %vm1898_vm7 = vsmask.f32 7424  ;;  %s251_s24 = scalar_lea.vmem %s3306_s6, %s2300_s19 }
  0x2a   : > { %v2526_v7 = vld [vmem:[%s3302_s2 + $0xe0] ss:$8 sps:$4 sm:$0xff]   ;;  %vm1899_vm9 = vmand %vm1897_vm6, %vm1898_vm7 }
  0x2b   : > { %554 = vmatpush1.bf16.msra.mxu0 %v2398_v38  ;;  %v2483_v38 = vld [vmem:[%s3301_s1 + $0x74] ss:$8 sps:$4 sm:$0xff]   ;;  %vm1900_vm10 = vmor %vm1899_vm9, %vm1896_vm8 }
  0x2c   : > { %995 = vmatpush1.bf16.msra.mxu1 %v2399_v39  ;;  %555 = vmatprep.subr.bf16.mxu0 %v2400_v40  ;;  %v2486_v39 = vld [vmem:[%s3302_s2 + $0x74] ss:$8 sps:$4 sm:$0xff]   ;;  %v2481_v40 = vld [vmem:[%s3301_s1 + $0x70] ss:$8 sps:$4 sm:$0xff]  }
  0x2d   : > { %996 = vmatprep.subr.bf16.mxu1 %v2402_v41  ;;  %v2484_v41 = vld [vmem:[%s3302_s2 + $0x70] ss:$8 sps:$4 sm:$0xff]  }
  0x2f   : > { %556 = vmatpush1.bf16.msra.mxu0 %v2404_v42  ;;  %v2489_v42 = vld [vmem:[%s3301_s1 + $0x84] ss:$8 sps:$4 sm:$0xff]  }
  0x30   : > { %997 = vmatpush1.bf16.msra.mxu1 %v2405_v43  ;;  %557 = vmatprep.subr.bf16.mxu0 %v2406_v44  ;;  %v2492_v43 = vld [vmem:[%s3302_s2 + $0x84] ss:$8 sps:$4 sm:$0xff]   ;;  %v2487_v44 = vld [vmem:[%s3301_s1 + $0x80] ss:$8 sps:$4 sm:$0xff]  }
  0x31   : > { %998 = vmatprep.subr.bf16.mxu1 %v2408_v45  ;;  %v2490_v45 = vld [vmem:[%s3302_s2 + $0x80] ss:$8 sps:$4 sm:$0xff]  }
  0x33   : > { %558 = vmatpush1.bf16.msra.mxu0 %v2410_v46  ;;  %v2495_v46 = vld [vmem:[%s3301_s1 + $0x94] ss:$8 sps:$4 sm:$0xff]  }
  0x34   : > { %999 = vmatpush1.bf16.msra.mxu1 %v2411_v47  ;;  %559 = vmatprep.subr.bf16.mxu0 %v2412_v49  ;;  %v2498_v47 = vld [vmem:[%s3302_s2 + $0x94] ss:$8 sps:$4 sm:$0xff]   ;;  %v2493_v49 = vld [vmem:[%s3301_s1 + $0x90] ss:$8 sps:$4 sm:$0xff]  }
  0x35   : > { %1000 = vmatprep.subr.bf16.mxu1 %v2414_v50  ;;  %v2496_v50 = vld [vmem:[%s3302_s2 + $0x90] ss:$8 sps:$4 sm:$0xff]  }
  0x37   : > { %560 = vmatpush1.bf16.msra.mxu0 %v2416_v53  ;;  %v2499_v53 = vld [vmem:[%s3301_s1 + $0xa0] ss:$8 sps:$4 sm:$0xff]  }
  0x38   : > { %1001 = vmatpush1.bf16.msra.mxu1 %v2417_v55  ;;  %561 = vmatprep.subr.bf16.mxu0 %v2418_v56  ;;  %v2507_v55 = vld [vmem:[%s3301_s1 + $0xb4] ss:$8 sps:$4 sm:$0xff]  }
  0x39   : > { %1002 = vmatprep.subr.bf16.mxu1 %v2420_v57  ;;  %v2510_v56 = vld [vmem:[%s3302_s2 + $0xb4] ss:$8 sps:$4 sm:$0xff]   ;;  %v2505_v57 = vld [vmem:[%s3301_s1 + $0xb0] ss:$8 sps:$4 sm:$0xff]  }
  0x3b   : > { %562 = vmatpush1.bf16.msra.mxu0 %v2422_v59  ;;  %v2513_v59 = vld [vmem:[%s3301_s1 + $0xc4] ss:$8 sps:$4 sm:$0xff]  }
  0x3c   : > { %1003 = vmatpush1.bf16.msra.mxu1 %v2423_v61  ;;  %563 = vmatprep.subr.bf16.mxu0 %v2424_v62  ;;  %v2516_v61 = vld [vmem:[%s3302_s2 + $0xc4] ss:$8 sps:$4 sm:$0xff]   ;;  %v2511_v62 = vld [vmem:[%s3301_s1 + $0xc0] ss:$8 sps:$4 sm:$0xff]  }
  0x3d   : > { %1004 = vmatprep.subr.bf16.mxu1 %v2426_v63  ;;  %v2514_v63 = vld [vmem:[%s3302_s2 + $0xc0] ss:$8 sps:$4 sm:$0xff]  }
  0x3f   : > { %564 = vmatpush1.bf16.msra.mxu0 %v2428_v0  ;;  %v2519_v0 = vld [vmem:[%s3301_s1 + $0xd4] ss:$8 sps:$4 sm:$0xff]  }
  0x40   : > { %1005 = vmatpush1.bf16.msra.mxu1 %v2429_v2  ;;  %565 = vmatprep.subr.bf16.mxu0 %v2430_v3  ;;  %v2517_v2 = vld [vmem:[%s3301_s1 + $0xd0] ss:$8 sps:$4 sm:$0xff]  }
  0x41   : > { %1006 = vmatprep.subr.bf16.mxu1 %v2432_v4  ;;  %v2520_v3 = vld [vmem:[%s3302_s2 + $0xd0] ss:$8 sps:$4 sm:$0xff]   ;;  %v2525_v4 = vld [vmem:[%s3301_s1 + $0xe4] ss:$8 sps:$4 sm:$0xff]  }
  0x43   : > { %566 = vmatpush1.bf16.msra.mxu0 %v2434_v5  ;;  %v2528_v5 = vld [vmem:[%s3302_s2 + $0xe4] ss:$8 sps:$4 sm:$0xff]  }
  0x44   : > { %1007 = vmatpush1.bf16.msra.mxu1 %v2435_v8  ;;  %740 = vmatprep.subr.bf16.mxu0 %v2441_v9  ;;  %v2531_v8 = vld [vmem:[%s3301_s1 + $0xf4] ss:$8 sps:$4 sm:$0xff]  }
  0x45   : > { %1179 = vmatprep.subr.bf16.mxu1 %v2444_v10  ;;  %v2534_v9 = vld [vmem:[%s3302_s2 + $0xf4] ss:$8 sps:$4 sm:$0xff]   ;;  %v2529_v10 = vld [vmem:[%s3301_s1 + $0xf0] ss:$8 sps:$4 sm:$0xff]  }
  0x46   : > { %568 = vmatmul.mubr.bf16.vlgmr.msra.gmra.mrb[0].mxu0 %v365_v12 }
  0x47   : > { %1009 = vmatmul.mubr.bf16.vlgmr.msra.gmra.mrb[0].mxu1 %v365_v12  ;;  %741 = vmatpush1.bf16.msra.mxu0 %v2439_v11  ;;  %v2532_v11 = vld [vmem:[%s3302_s2 + $0xf0] ss:$8 sps:$4 sm:$0xff]   ;;  %v2537_v12 = vld [vmem:[%s3301_s1 + $0x204] ss:$8 sps:$4 sm:$0xff]  }
  0x48   : > { %1180 = vmatpush1.bf16.msra.mxu1 %v2442_v13  ;;  %742 = vmatprep.subr.bf16.mxu0 %v2447_v14  ;;  %v2540_v13 = vld [vmem:[%s3302_s2 + $0x204] ss:$8 sps:$4 sm:$0xff]   ;;  %v2535_v14 = vld [vmem:[%s3301_s1 + $0x200] ss:$8 sps:$4 sm:$0xff]  }
  0x49   : > { %1181 = vmatprep.subr.bf16.mxu1 %v2450_v15  ;;  %772 = vmatprep.mubr.bf16.mxu0 %v2838_v48  ;;  %v2538_v15 = vld [vmem:[%s3302_s2 + $0x200] ss:$8 sps:$4 sm:$0xff]  }
  0x4a   : > { %1211 = vmatprep.mubr.bf16.mxu1 %v2838_v48 }
  0x4b   : > { %743 = vmatpush1.bf16.msra.mxu0 %v2445_v16  ;;  %v2543_v16 = vld [vmem:[%s3301_s1 + $0x214] ss:$8 sps:$4 sm:$0xff]  }
  0x4c   : > { %1182 = vmatpush1.bf16.msra.mxu1 %v2448_v17  ;;  %744 = vmatprep.subr.bf16.mxu0 %v2453_v18  ;;  %v2546_v17 = vld [vmem:[%s3302_s2 + $0x214] ss:$8 sps:$4 sm:$0xff]   ;;  %v1256_v18 = vrot.slane %v2838_v48, 1  ;;  %v2549_v48 = vld [vmem:[%s3301_s1 + $0x224] ss:$8 sps:$4 sm:$0xff]  }
  0x4d   : > { %1183 = vmatprep.subr.bf16.mxu1 %v2456_v19  ;;  %v2541_v19 = vld [vmem:[%s3301_s1 + $0x210] ss:$8 sps:$4 sm:$0xff]  }
  0x4f   : > { %745 = vmatpush1.bf16.msra.mxu0 %v2451_v20  ;;  %v2544_v20 = vld [vmem:[%s3302_s2 + $0x210] ss:$8 sps:$4 sm:$0xff]  }
  0x50   : > { %1184 = vmatpush1.bf16.msra.mxu1 %v2454_v21  ;;  %746 = vmatprep.subr.bf16.mxu0 %v2459_v22  ;;  %v2552_v21 = vld [vmem:[%s3302_s2 + $0x224] ss:$8 sps:$4 sm:$0xff]   ;;  %v2547_v22 = vld [vmem:[%s3301_s1 + $0x220] ss:$8 sps:$4 sm:$0xff]  }
  0x51   : > { %1185 = vmatprep.subr.bf16.mxu1 %v2462_v23  ;;  %v2550_v23 = vld [vmem:[%s3302_s2 + $0x220] ss:$8 sps:$4 sm:$0xff]  }
  0x53   : > { %747 = vmatpush1.bf16.msra.mxu0 %v2457_v24  ;;  %v2555_v24 = vld [vmem:[%s3301_s1 + $0x234] ss:$8 sps:$4 sm:$0xff]  }
  0x54   : > { %1186 = vmatpush1.bf16.msra.mxu1 %v2460_v25  ;;  %748 = vmatprep.subr.bf16.mxu0 %v2465_v26  ;;  %v2558_v25 = vld [vmem:[%s3302_s2 + $0x234] ss:$8 sps:$4 sm:$0xff]   ;;  %v2553_v26 = vld [vmem:[%s3301_s1 + $0x230] ss:$8 sps:$4 sm:$0xff]  }
  0x55   : > { %1187 = vmatprep.subr.bf16.mxu1 %v2468_v27  ;;  %v2556_v27 = vld [vmem:[%s3302_s2 + $0x230] ss:$8 sps:$4 sm:$0xff]  }
  0x57   : > { %749 = vmatpush1.bf16.msra.mxu0 %v2463_v28  ;;  %v2561_v28 = vld [vmem:[%s3301_s1 + $0x244] ss:$8 sps:$4 sm:$0xff]  }
  0x58   : > { %1188 = vmatpush1.bf16.msra.mxu1 %v2466_v29  ;;  %750 = vmatprep.subr.bf16.mxu0 %v2471_v30  ;;  %v2564_v29 = vld [vmem:[%s3302_s2 + $0x244] ss:$8 sps:$4 sm:$0xff]   ;;  %v2559_v30 = vld [vmem:[%s3301_s1 + $0x240] ss:$8 sps:$4 sm:$0xff]  }
  0x59   : > { %1189 = vmatprep.subr.bf16.mxu1 %v2474_v31  ;;  %v2562_v31 = vld [vmem:[%s3302_s2 + $0x240] ss:$8 sps:$4 sm:$0xff]  }
  0x5b   : > { %751 = vmatpush1.bf16.msra.mxu0 %v2469_v32  ;;  %v2567_v32 = vld [vmem:[%s3301_s1 + $0x254] ss:$8 sps:$4 sm:$0xff]  }
  0x5c   : > { %1190 = vmatpush1.bf16.msra.mxu1 %v2472_v33  ;;  %752 = vmatprep.subr.bf16.mxu0 %v2477_v34  ;;  %v2570_v33 = vld [vmem:[%s3302_s2 + $0x254] ss:$8 sps:$4 sm:$0xff]   ;;  %v2565_v34 = vld [vmem:[%s3301_s1 + $0x250] ss:$8 sps:$4 sm:$0xff]  }
  0x5d   : > { %1191 = vmatprep.subr.bf16.mxu1 %v2480_v35  ;;  %v2568_v35 = vld [vmem:[%s3302_s2 + $0x250] ss:$8 sps:$4 sm:$0xff]  }
  0x5f   : > { %753 = vmatpush1.bf16.msra.mxu0 %v2475_v36  ;;  %v2573_v36 = vld [vmem:[%s3301_s1 + $0x264] ss:$8 sps:$4 sm:$0xff]  }
  0x60   : > { %1192 = vmatpush1.bf16.msra.mxu1 %v2478_v37  ;;  %754 = vmatprep.subr.bf16.mxu0 %v2483_v38  ;;  %v2576_v37 = vld [vmem:[%s3302_s2 + $0x264] ss:$8 sps:$4 sm:$0xff]   ;;  %v2571_v38 = vld [vmem:[%s3301_s1 + $0x260] ss:$8 sps:$4 sm:$0xff]  }
  0x61   : > { %1193 = vmatprep.subr.bf16.mxu1 %v2486_v39  ;;  %v2574_v39 = vld [vmem:[%s3302_s2 + $0x260] ss:$8 sps:$4 sm:$0xff]  }
  0x63   : > { %755 = vmatpush1.bf16.msra.mxu0 %v2481_v40  ;;  %v2579_v40 = vld [vmem:[%s3301_s1 + $0x274] ss:$8 sps:$4 sm:$0xff]  }
  0x64   : > { %1194 = vmatpush1.bf16.msra.mxu1 %v2484_v41  ;;  %756 = vmatprep.subr.bf16.mxu0 %v2489_v42  ;;  %v2582_v41 = vld [vmem:[%s3302_s2 + $0x274] ss:$8 sps:$4 sm:$0xff]   ;;  %v2577_v42 = vld [vmem:[%s3301_s1 + $0x270] ss:$8 sps:$4 sm:$0xff]  }
  0x65   : > { %1195 = vmatprep.subr.bf16.mxu1 %v2492_v43  ;;  %v2580_v43 = vld [vmem:[%s3302_s2 + $0x270] ss:$8 sps:$4 sm:$0xff]  }
  0x67   : > { %757 = vmatpush1.bf16.msra.mxu0 %v2487_v44  ;;  %v2585_v44 = vld [vmem:[%s3301_s1 + $0x284] ss:$8 sps:$4 sm:$0xff]  }
  0x68   : > { %1196 = vmatpush1.bf16.msra.mxu1 %v2490_v45  ;;  %758 = vmatprep.subr.bf16.mxu0 %v2495_v46  ;;  %v2588_v45 = vld [vmem:[%s3302_s2 + $0x284] ss:$8 sps:$4 sm:$0xff]   ;;  %v2583_v46 = vld [vmem:[%s3301_s1 + $0x280] ss:$8 sps:$4 sm:$0xff]  }
  0x69   : > { %1197 = vmatprep.subr.bf16.mxu1 %v2498_v47  ;;  %v2586_v47 = vld [vmem:[%s3302_s2 + $0x280] ss:$8 sps:$4 sm:$0xff]  }
  0x6b   : > { %759 = vmatpush1.bf16.msra.mxu0 %v2493_v49  ;;  %v2591_v49 = vld [vmem:[%s3301_s1 + $0x294] ss:$8 sps:$4 sm:$0xff]  }
  0x6c   : > { %1198 = vmatpush1.bf16.msra.mxu1 %v2496_v50  ;;  %760 = vmatprep.subr.bf16.mxu0 %v2501_v51  ;;  %v2594_v50 = vld [vmem:[%s3302_s2 + $0x294] ss:$8 sps:$4 sm:$0xff]   ;;  %v2589_v51 = vld [vmem:[%s3301_s1 + $0x290] ss:$8 sps:$4 sm:$0xff]  }
  0x6d   : > { %1199 = vmatprep.subr.bf16.mxu1 %v2504_v52  ;;  %v2592_v52 = vld [vmem:[%s3302_s2 + $0x290] ss:$8 sps:$4 sm:$0xff]  }
  0x6f   : > { %761 = vmatpush1.bf16.msra.mxu0 %v2499_v53  ;;  %v2597_v53 = vld [vmem:[%s3301_s1 + $0x2a4] ss:$8 sps:$4 sm:$0xff]  }
  0x70   : > { %1200 = vmatpush1.bf16.msra.mxu1 %v2502_v54  ;;  %762 = vmatprep.subr.bf16.mxu0 %v2507_v55  ;;  %v2600_v54 = vld [vmem:[%s3302_s2 + $0x2a4] ss:$8 sps:$4 sm:$0xff]   ;;  %v2595_v55 = vld [vmem:[%s3301_s1 + $0x2a0] ss:$8 sps:$4 sm:$0xff]  }
  0x71   : > { %1201 = vmatprep.subr.bf16.mxu1 %v2510_v56  ;;  %v2598_v56 = vld [vmem:[%s3302_s2 + $0x2a0] ss:$8 sps:$4 sm:$0xff]  }
  0x73   : > { %763 = vmatpush1.bf16.msra.mxu0 %v2505_v57  ;;  %v2603_v57 = vld [vmem:[%s3301_s1 + $0x2b4] ss:$8 sps:$4 sm:$0xff]  }
  0x74   : > { %1202 = vmatpush1.bf16.msra.mxu1 %v2508_v58  ;;  %764 = vmatprep.subr.bf16.mxu0 %v2513_v59  ;;  %v2606_v58 = vld [vmem:[%s3302_s2 + $0x2b4] ss:$8 sps:$4 sm:$0xff]   ;;  %v2601_v59 = vld [vmem:[%s3301_s1 + $0x2b0] ss:$8 sps:$4 sm:$0xff]  }
  0x75   : > { %1203 = vmatprep.subr.bf16.mxu1 %v2516_v61  ;;  %v2604_v61 = vld [vmem:[%s3302_s2 + $0x2b0] ss:$8 sps:$4 sm:$0xff]  }
  0x77   : > { %765 = vmatpush1.bf16.msra.mxu0 %v2511_v62  ;;  %v2609_v62 = vld [vmem:[%s3301_s1 + $0x2c4] ss:$8 sps:$4 sm:$0xff]  }
  0x78   : > { %1204 = vmatpush1.bf16.msra.mxu1 %v2514_v63  ;;  %766 = vmatprep.subr.bf16.mxu0 %v2519_v0  ;;  %v2612_v63 = vld [vmem:[%s3302_s2 + $0x2c4] ss:$8 sps:$4 sm:$0xff]   ;;  %v2607_v0 = vld [vmem:[%s3301_s1 + $0x2c0] ss:$8 sps:$4 sm:$0xff]  }
  0x79   : > { %1205 = vmatprep.subr.bf16.mxu1 %v2522_v1  ;;  %v2610_v1 = vld [vmem:[%s3302_s2 + $0x2c0] ss:$8 sps:$4 sm:$0xff]  }
  0x7b   : > { %767 = vmatpush1.bf16.msra.mxu0 %v2517_v2  ;;  %v2615_v2 = vld [vmem:[%s3301_s1 + $0x2d4] ss:$8 sps:$4 sm:$0xff]  }
  0x7c   : > { %1206 = vmatpush1.bf16.msra.mxu1 %v2520_v3  ;;  %768 = vmatprep.subr.bf16.mxu0 %v2525_v4  ;;  %v2618_v3 = vld [vmem:[%s3302_s2 + $0x2d4] ss:$8 sps:$4 sm:$0xff]   ;;  %v2613_v4 = vld [vmem:[%s3301_s1 + $0x2d0] ss:$8 sps:$4 sm:$0xff]  }
  0x7d   : > { %1207 = vmatprep.subr.bf16.mxu1 %v2528_v5  ;;  %v2616_v5 = vld [vmem:[%s3302_s2 + $0x2d0] ss:$8 sps:$4 sm:$0xff]  }
  0x7f   : > { %769 = vmatpush1.bf16.msra.mxu0 %v2523_v6  ;;  %v2621_v6 = vld [vmem:[%s3301_s1 + $0x2e4] ss:$8 sps:$4 sm:$0xff]  }
  0x80   : > { %1208 = vmatpush1.bf16.msra.mxu1 %v2526_v7  ;;  %770 = vmatprep.subr.bf16.mxu0 %v2531_v8  ;;  %v2624_v7 = vld [vmem:[%s3302_s2 + $0x2e4] ss:$8 sps:$4 sm:$0xff]   ;;  %v2619_v8 = vld [vmem:[%s3301_s1 + $0x2e0] ss:$8 sps:$4 sm:$0xff]  }
  0x81   : > { %1209 = vmatprep.subr.bf16.mxu1 %v2534_v9  ;;  %v2622_v9 = vld [vmem:[%s3302_s2 + $0x2e0] ss:$8 sps:$4 sm:$0xff]  }
  0x83   : > { %771 = vmatpush1.bf16.msra.mxu0 %v2529_v10  ;;  %v2627_v10 = vld [vmem:[%s3301_s1 + $0x2f4] ss:$8 sps:$4 sm:$0xff]  }
  0x84   : > { %1210 = vmatpush1.bf16.msra.mxu1 %v2532_v11  ;;  %1419 = vmatprep.subr.bf16.mxu0 %v2537_v12  ;;  %v2630_v11 = vld [vmem:[%s3302_s2 + $0x2f4] ss:$8 sps:$4 sm:$0xff]   ;;  %v2625_v12 = vld [vmem:[%s3301_s1 + $0x2f0] ss:$8 sps:$4 sm:$0xff]  }
  0x85   : > { %1659 = vmatprep.subr.bf16.mxu1 %v2540_v13  ;;  %v2628_v13 = vld [vmem:[%s3302_s2 + $0x2f0] ss:$8 sps:$4 sm:$0xff]  }
  0x86   : > { %773 = vmatmul.mubr.bf16.vlgmr.msra.gmra.mrb[0].mxu0 %v2863_v60 }
  0x87   : > { %1212 = vmatmul.mubr.bf16.vlgmr.msra.gmra.mrb[0].mxu1 %v2863_v60  ;;  %1420 = vmatpush1.bf16.msra.mxu0 %v2535_v14  ;;  %v1255_v14 = vrot.slane %v2863_v60, 1 }
  0x88   : > { %1660 = vmatpush1.bf16.msra.mxu1 %v2538_v15  ;;  %1421 = vmatprep.subr.bf16.mxu0 %v2543_v16  ;;  %v2639_v15 = vmov 0.0  }
  0x89   : > { %1661 = vmatprep.subr.bf16.mxu1 %v2546_v17  ;;  %1451 = vmatprep.mubr.bf16.mxu0 %v1256_v18 }
  0x8a   : > { %1691 = vmatprep.mubr.bf16.mxu1 %v1256_v18 }
  0x8b   : > { %1422 = vmatpush1.bf16.msra.mxu0 %v2541_v19 }
  0x8c   : > { %1662 = vmatpush1.bf16.msra.mxu1 %v2544_v20  ;;  %1423 = vmatprep.subr.bf16.mxu0 %v2549_v48 }
  0x8d   : > { %1663 = vmatprep.subr.bf16.mxu1 %v2552_v21 }
  0x8f   : > { %1424 = vmatpush1.bf16.msra.mxu0 %v2547_v22 }
  0x90   : > { %1664 = vmatpush1.bf16.msra.mxu1 %v2550_v23  ;;  %1425 = vmatprep.subr.bf16.mxu0 %v2555_v24 }
  0x91   : > { %1665 = vmatprep.subr.bf16.mxu1 %v2558_v25 }
  0x93   : > { %1426 = vmatpush1.bf16.msra.mxu0 %v2553_v26 }
  0x94   : > { %1666 = vmatpush1.bf16.msra.mxu1 %v2556_v27  ;;  %1427 = vmatprep.subr.bf16.mxu0 %v2561_v28  ;;  %v1710_v28 = vld [vmem:[%s3303_s3] sm:$0x7f] }
  0x95   : > { %1667 = vmatprep.subr.bf16.mxu1 %v2564_v29  ;;  %v1793_v29 = vld [vmem:[%s3304_s4] sm:$0x7f] }
  0x97   : > { %1428 = vmatpush1.bf16.msra.mxu0 %v2559_v30  ;;  %v1872_v30 = vlaneseq }
  0x98   : > { %1668 = vmatpush1.bf16.msra.mxu1 %v2562_v31  ;;  %1429 = vmatprep.subr.bf16.mxu0 %v2567_v32 }
  0x99   : > { %1669 = vmatprep.subr.bf16.mxu1 %v2570_v33  ;;  %v1873_v31 = vshrl.u32 %v1872_v30, 7  ;;  %v1870_v33 = vld [vmem:[%s3305_s5] sm:$0x3] }
  0x9b   : > { %1430 = vmatpush1.bf16.msra.mxu0 %v2565_v34  ;;  %v1874_v32 = vsub.s32 0, %v1873_v31  ;;  %v1878_v34 = vsub.s32 1, %v1873_v31 }
  0x9c   : > { %1670 = vmatpush1.bf16.msra.mxu1 %v2568_v35  ;;  %1431 = vmatprep.subr.bf16.mxu0 %v2573_v36 }
  0x9d   : > { %1671 = vmatprep.subr.bf16.mxu1 %v2576_v37  ;;  %v1875_v35 = vrot.slane %v1870_v33, %v1874_v32 }
  0x9f   : > { %1432 = vmatpush1.bf16.msra.mxu0 %v2571_v38  ;;  %v1879_v38 = vrot.slane %v1870_v33, %v1878_v34 }
  0xa0   : > { %1672 = vmatpush1.bf16.msra.mxu1 %v2574_v39  ;;  %1433 = vmatprep.subr.bf16.mxu0 %v2579_v40 }
  0xa1   : > { %1673 = vmatprep.subr.bf16.mxu1 %v2582_v41 }
  0xa3   : > { %1434 = vmatpush1.bf16.msra.mxu0 %v2577_v42 }
  0xa4   : > { %1674 = vmatpush1.bf16.msra.mxu1 %v2580_v43  ;;  %1435 = vmatprep.subr.bf16.mxu0 %v2585_v44 }
  0xa5   : > { %1675 = vmatprep.subr.bf16.mxu1 %v2588_v45 }
  0xa7   : > { %1436 = vmatpush1.bf16.msra.mxu0 %v2583_v46 }
  0xa8   : > { %1676 = vmatpush1.bf16.msra.mxu1 %v2586_v47  ;;  %1437 = vmatprep.subr.bf16.mxu0 %v2591_v49  ;;  %v1901_v47 = vld [vmem:[%s251_s24] sm:$0xff] }
  0xa9   : > { %1677 = vmatprep.subr.bf16.mxu1 %v2594_v50 }
  0xab   : > { %1438 = vmatpush1.bf16.msra.mxu0 %v2589_v51 }
  0xac   : > { %1678 = vmatpush1.bf16.msra.mxu1 %v2592_v52  ;;  %1439 = vmatprep.subr.bf16.mxu0 %v2597_v53 }
  0xad   : > { %1679 = vmatprep.subr.bf16.mxu1 %v2600_v54 }
  0xaf   : > { %1440 = vmatpush1.bf16.msra.mxu0 %v2595_v55 }
  0xb0   : > { %1680 = vmatpush1.bf16.msra.mxu1 %v2598_v56  ;;  %1441 = vmatprep.subr.bf16.mxu0 %v2603_v57 }
  0xb1   : > { %1681 = vmatprep.subr.bf16.mxu1 %v2606_v58 }
  0xb3   : > { %1442 = vmatpush1.bf16.msra.mxu0 %v2601_v59 }
  0xb4   : > { %1682 = vmatpush1.bf16.msra.mxu1 %v2604_v61  ;;  %1443 = vmatprep.subr.bf16.mxu0 %v2609_v62 }
  0xb5   : > { %1683 = vmatprep.subr.bf16.mxu1 %v2612_v63 }
  0xb7   : > { %1444 = vmatpush1.bf16.msra.mxu0 %v2607_v0 }
  0xb8   : > { %1684 = vmatpush1.bf16.msra.mxu1 %v2610_v1  ;;  %1445 = vmatprep.subr.bf16.mxu0 %v2615_v2 }
  0xb9   : > { %1685 = vmatprep.subr.bf16.mxu1 %v2618_v3 }
  0xbb   : > { %1446 = vmatpush1.bf16.msra.mxu0 %v2613_v4 }
  0xbc   : > { %1686 = vmatpush1.bf16.msra.mxu1 %v2616_v5  ;;  %1447 = vmatprep.subr.bf16.mxu0 %v2621_v6 }
  0xbd   : > { %1687 = vmatprep.subr.bf16.mxu1 %v2624_v7 }
  0xbf   : > { %1448 = vmatpush1.bf16.msra.mxu0 %v2619_v8 }
  0xc0   : > { %1688 = vmatpush1.bf16.msra.mxu1 %v2622_v9  ;;  %1449 = vmatprep.subr.bf16.mxu0 %v2627_v10 }
  0xc1   : > { %1689 = vmatprep.subr.bf16.mxu1 %v2630_v11 }
  0xc3   : > { %1450 = vmatpush1.bf16.msra.mxu0 %v2625_v12 }
  0xc4   : > { %1690 = vmatpush1.bf16.msra.mxu1 %v2628_v13 }
  0xc6   : > { %1452 = vmatmul.mubr.bf16.vlgmr.msra.gmra.mrb[0].mxu0 %v1255_v14 }
  0xc7   : > { %1692 = vmatmul.mubr.bf16.vlgmr.msra.gmra.mrb[0].mxu1 %v1255_v14  ;;  %1786 = vmatprep.mubr.f32.mxu0 %v2639_v15 }
  0xc8   : > { %1861 = vmatprep.mubr.f32.mxu1 %v2639_v15 }
 0x199   : > { %v1453_v16 = vpop.f32.mrb[0].mxu0 }
 0x19a   : > { %v1693_v17 = vpop.f32.mrb[0].mxu1  ;;  %v1455_v19 = vpop.f32.mrb[1].mxu0 }
 0x19b   : > { %v1706_v18 = vmax.f32 %v1453_v16, %v1693_v17  ;;  %v1695_v20 = vpop.f32.mrb[1].mxu1  ;;  %v1457_v21 = vpop.f32.mrb[2].mxu0 }
 0x19c   : > { %v1707_v48 = vmax.f32 %v1455_v19, %v1695_v20  ;;  %v1697_v22 = vpop.f32.mrb[2].mxu1  ;;  %v1459_v24 = vpop.f32.mrb[3].mxu0 }
 0x19d   : > { %v1708_v23 = vmax.f32 %v1457_v21, %v1697_v22  ;;  %v1699_v25 = vpop.f32.mrb[3].mxu1 }
 0x19e   : > { %v1709_v60 = vmax.f32 %v1459_v24, %v1699_v25 }
 0x19f   : > { %v2305_v26 = vpack.c.bf16 %v1708_v23, %v1706_v18 }
 0x1a0   : > { %v2302_v27 = vpack.c.bf16 %v1709_v60, %v1707_v48 }
 0x1a2   : > { %2304 = vmatprep.subr.msk.bf16.mxu0 %vm2303_vm2, %v2302_v27  ;;  %2310 = vmatprep.subr.msk.bf16.mxu1 %vm2303_vm2, %v2302_v27 }
 0x1a3   : > { %2307 = vmatpush1.bf16.msk.msra.mxu0 %vm2303_vm2, %v2305_v26  ;;  %2313 = vmatpush1.bf16.msk.msra.mxu1 %vm2303_vm2, %v2305_v26 }
 0x1a6   : > { %2292 = vmatmul.mubr.msk.f32.vlgmr.msra.gmra.mrb[4].mxu0 %vm1711_vm3, %v1710_v28  ;;  %2295 = vmatmul.mubr.msk.f32.vlgmr.msra.gmra.mrb[4].mxu1 %vm1711_vm3, %v1793_v29 }
 0x279   : > { %v1788_v36 = vpop.f32.mrb[4].mxu0  ;;  %v1863_v37 = vpop.f32.mrb[4].mxu1 }
 0x27a   : > { %v1868_v39 = vmax.f32 %v1788_v36, %v1863_v37  ;;  %v1790_v40 = vpop.f32.mrb[5].mxu0  ;;  %v1865_v41 = vpop.f32.mrb[5].mxu1 }
 0x27b   : > { %v1869_v42 = vmax.f32 %v1790_v40, %v1865_v41 }
 0x27c   : > { %v1882_v43 = vadd.f32 %v1875_v35, %v1868_v39 }
 0x27d   : > { %v1883_v44 = vadd.f32 %v1879_v38, %v1869_v42 }
 0x27e   : > { %v1884_v45 = vmax.f32 %v1882_v43, 0.0 }
 0x27f   : > { %v1885_v46 = vmax.f32 %v1883_v44, 0.0 }
 0x281   : > { %v2301_v49 = vpack.c.bf16 %v1885_v46, %v1884_v45 }
 0x283   : > { %v1902_v50 = vsel %vm1900_vm10, %v2301_v49, %v1901_v47 }
 0x284   : > { %1903 = vst [vmem:[%s251_s24] sm:$0xff] %v1902_v50 }
 0x285 PF: > { %s16_s21 = sadd.s32 1, %s2637_s21  }
 0x286   : > { %p13_p4 = scmp.ge.s32.totalorder %s16_s21, 4  }
 0x288   :  { %15 = sbr.rel (!%p13_p4) target bundleno = 1 (0x1), region = 78 }

// kernel: custom_cnn_forward.5
= control target key start
LH: loop header
LB: loop body
LE: loop exit
PB: predicated region body
PF: predicated region fallthrough
CT: control target
= control target key end

     0   :  { %v222_v38 = vlaneseq  ;;  %v2399_v39 = vmov 1966171168   ;;  %s3146_s0 = inlined_call_operand.vmem [shape: bf16[2,1568], index: 0, kind: input, shape index: {}]   ;;  %s3147_s1 = inlined_call_operand.vmem [shape: bf16[1568,256], index: 1, kind: input, shape index: {}]   ;;  %s3148_s2 = inlined_call_operand.vmem [shape: f32[1,256], index: 2, kind: input, shape index: {}]   ;;  %s3149_s3 = inlined_call_operand.vmem [shape: bf16[256,10], index: 3, kind: input, shape index: {}]   ;;  %s3150_s4 = inlined_call_operand.vmem [shape: f32[1,10], index: 4, kind: input, shape index: {}]   ;;  %s3151_s5 = inlined_call_operand.hbm [shape: f32[2,10], index: 5, kind: output, shape index: {}]  }
   0x1   :  { %v2063_v0 = vld [vmem:[%s3147_s1 + $0x4] ss:$8 sps:$4 sm:$0xff]   ;;  %v2067_v2 = vld [vmem:[%s3147_s1] ss:$8 sps:$4 sm:$0xff]   ;;  %v2069_v4 = vld [vmem:[%s3147_s1 + $0x14] ss:$8 sps:$4 sm:$0xff]   ;;  %v236_v40 = vunpack.c.l.s4 %v2399_v39 }
   0x2   :  { %v2065_v1 = vld [vmem:[%s3147_s1 + $0x304] ss:$8 sps:$4 sm:$0xff]   ;;  %1318 = vmatprep.subr.bf16.mxu1 %v2063_v0  ;;  %v2068_v3 = vld [vmem:[%s3147_s1 + $0x300] ss:$8 sps:$4 sm:$0xff]   ;;  %v2071_v5 = vld [vmem:[%s3147_s1 + $0x314] ss:$8 sps:$4 sm:$0xff]  }
   0x3   :  { %1441 = vmatprep.subr.bf16.mxu0 %v2065_v1  ;;  %1319 = vmatpush1.bf16.msra.mxu1 %v2067_v2  ;;  %v2073_v6 = vld [vmem:[%s3147_s1 + $0x10] ss:$8 sps:$4 sm:$0xff]   ;;  %v2075_v8 = vld [vmem:[%s3147_s1 + $0x24] ss:$8 sps:$4 sm:$0xff]   ;;  %v2079_v10 = vld [vmem:[%s3147_s1 + $0x20] ss:$8 sps:$4 sm:$0xff]   ;;  %v237_v46 = vunpack.c.0.s8 %v236_v40 }
   0x4   :  { %1442 = vmatpush1.bf16.msra.mxu0 %v2068_v3  ;;  %1320 = vmatprep.subr.bf16.mxu1 %v2069_v4  ;;  %v2074_v7 = vld [vmem:[%s3147_s1 + $0x310] ss:$8 sps:$4 sm:$0xff]   ;;  %v2077_v9 = vld [vmem:[%s3147_s1 + $0x324] ss:$8 sps:$4 sm:$0xff]   ;;  %v2080_v11 = vld [vmem:[%s3147_s1 + $0x320] ss:$8 sps:$4 sm:$0xff]  }
   0x5   :  { %1443 = vmatprep.subr.bf16.mxu0 %v2071_v5  ;;  %v2081_v12 = vld [vmem:[%s3147_s1 + $0x34] ss:$8 sps:$4 sm:$0xff]   ;;  %v2085_v14 = vld [vmem:[%s3147_s1 + $0x30] ss:$8 sps:$4 sm:$0xff]   ;;  %v2087_v16 = vld [vmem:[%s3147_s1 + $0x44] ss:$8 sps:$4 sm:$0xff]  }
   0x6   :  { %v2083_v13 = vld [vmem:[%s3147_s1 + $0x334] ss:$8 sps:$4 sm:$0xff]   ;;  %v2086_v15 = vld [vmem:[%s3147_s1 + $0x330] ss:$8 sps:$4 sm:$0xff]   ;;  %v2089_v17 = vld [vmem:[%s3147_s1 + $0x344] ss:$8 sps:$4 sm:$0xff]  }
   0x7   :  { %1321 = vmatpush1.bf16.msra.mxu1 %v2073_v6  ;;  %v2091_v18 = vld [vmem:[%s3147_s1 + $0x40] ss:$8 sps:$4 sm:$0xff]   ;;  %v2093_v20 = vld [vmem:[%s3147_s1 + $0x54] ss:$8 sps:$4 sm:$0xff]   ;;  %v2097_v22 = vld [vmem:[%s3147_s1 + $0x50] ss:$8 sps:$4 sm:$0xff]  }
   0x8   :  { %1444 = vmatpush1.bf16.msra.mxu0 %v2074_v7  ;;  %1322 = vmatprep.subr.bf16.mxu1 %v2075_v8  ;;  %v2092_v19 = vld [vmem:[%s3147_s1 + $0x340] ss:$8 sps:$4 sm:$0xff]   ;;  %v2095_v21 = vld [vmem:[%s3147_s1 + $0x354] ss:$8 sps:$4 sm:$0xff]   ;;  %v2098_v23 = vld [vmem:[%s3147_s1 + $0x350] ss:$8 sps:$4 sm:$0xff]  }
   0x9   :  { %1445 = vmatprep.subr.bf16.mxu0 %v2077_v9  ;;  %v2099_v24 = vld [vmem:[%s3147_s1 + $0x64] ss:$8 sps:$4 sm:$0xff]   ;;  %v2103_v26 = vld [vmem:[%s3147_s1 + $0x60] ss:$8 sps:$4 sm:$0xff]   ;;  %v2105_v28 = vld [vmem:[%s3147_s1 + $0x74] ss:$8 sps:$4 sm:$0xff]  }
   0xa   :  { %v2101_v25 = vld [vmem:[%s3147_s1 + $0x364] ss:$8 sps:$4 sm:$0xff]   ;;  %v2104_v27 = vld [vmem:[%s3147_s1 + $0x360] ss:$8 sps:$4 sm:$0xff]   ;;  %v2107_v29 = vld [vmem:[%s3147_s1 + $0x374] ss:$8 sps:$4 sm:$0xff]  }
   0xb   :  { %1323 = vmatpush1.bf16.msra.mxu1 %v2079_v10  ;;  %v2109_v30 = vld [vmem:[%s3147_s1 + $0x70] ss:$8 sps:$4 sm:$0xff]   ;;  %v2111_v32 = vld [vmem:[%s3147_s1 + $0x84] ss:$8 sps:$4 sm:$0xff]   ;;  %v2115_v34 = vld [vmem:[%s3147_s1 + $0x80] ss:$8 sps:$4 sm:$0xff]  }
   0xc   :  { %1446 = vmatpush1.bf16.msra.mxu0 %v2080_v11  ;;  %1324 = vmatprep.subr.bf16.mxu1 %v2081_v12  ;;  %v2110_v31 = vld [vmem:[%s3147_s1 + $0x370] ss:$8 sps:$4 sm:$0xff]   ;;  %v2113_v33 = vld [vmem:[%s3147_s1 + $0x384] ss:$8 sps:$4 sm:$0xff]   ;;  %v2116_v35 = vld [vmem:[%s3147_s1 + $0x380] ss:$8 sps:$4 sm:$0xff]  }
   0xd   :  { %1447 = vmatprep.subr.bf16.mxu0 %v2083_v13  ;;  %v2117_v36 = vld [vmem:[%s3147_s1 + $0x94] ss:$8 sps:$4 sm:$0xff]   ;;  %v2121_v41 = vld [vmem:[%s3147_s1 + $0x90] ss:$8 sps:$4 sm:$0xff]   ;;  %v2123_v43 = vld [vmem:[%s3147_s1 + $0xa4] ss:$8 sps:$4 sm:$0xff]  }
   0xe   :  { %v2119_v37 = vld [vmem:[%s3147_s1 + $0x394] ss:$8 sps:$4 sm:$0xff]   ;;  %v2122_v42 = vld [vmem:[%s3147_s1 + $0x390] ss:$8 sps:$4 sm:$0xff]   ;;  %v2125_v44 = vld [vmem:[%s3147_s1 + $0x3a4] ss:$8 sps:$4 sm:$0xff]  }
   0xf   :  { %1325 = vmatpush1.bf16.msra.mxu1 %v2085_v14  ;;  %v2558_v45 = vshrl.u32 %v222_v38, 7  ;;  %v2127_v47 = vld [vmem:[%s3147_s1 + $0xa0] ss:$8 sps:$4 sm:$0xff]   ;;  %v2129_v49 = vld [vmem:[%s3147_s1 + $0xb4] ss:$8 sps:$4 sm:$0xff]  }
  0x10   :  { %1448 = vmatpush1.bf16.msra.mxu0 %v2086_v15  ;;  %1326 = vmatprep.subr.bf16.mxu1 %v2087_v16  ;;  %v2128_v48 = vld [vmem:[%s3147_s1 + $0x3a0] ss:$8 sps:$4 sm:$0xff]   ;;  %v2131_v50 = vld [vmem:[%s3147_s1 + $0x3b4] ss:$8 sps:$4 sm:$0xff]   ;;  %v2133_v53 = vld [vmem:[%s3147_s1 + $0xb0] ss:$8 sps:$4 sm:$0xff]  }
  0x11   :  { %1449 = vmatprep.subr.bf16.mxu0 %v2089_v17  ;;  %v2573_v51 = vsub.s32 %v237_v46, %v2558_v45  ;;  %v22_v52 = vld [vmem:[%s3146_s0] sm:$0xff]  ;;  %v2134_v56 = vld [vmem:[%s3147_s1 + $0x3b0] ss:$8 sps:$4 sm:$0xff]   ;;  %v2141_v1 = vld [vmem:[%s3147_s1 + $0xd4] ss:$8 sps:$4 sm:$0xff]  }
  0x12   :  { %v234_v54 = vcombine.high %v22_v52, %v22_v52  ;;  %v2135_v57 = vld [vmem:[%s3147_s1 + $0xc4] ss:$8 sps:$4 sm:$0xff]   ;;  %v2139_v61 = vld [vmem:[%s3147_s1 + $0xc0] ss:$8 sps:$4 sm:$0xff]   ;;  %v2143_v2 = vld [vmem:[%s3147_s1 + $0x3d4] ss:$8 sps:$4 sm:$0xff]  }
  0x13   :  { %1327 = vmatpush1.bf16.msra.mxu1 %v2091_v18  ;;  %v241_v55 = vrot.slane %v22_v52, %v2573_v51  ;;  %v2137_v58 = vld [vmem:[%s3147_s1 + $0x3c4] ss:$8 sps:$4 sm:$0xff]   ;;  %v2140_v0 = vld [vmem:[%s3147_s1 + $0x3c0] ss:$8 sps:$4 sm:$0xff]   ;;  %v2145_v4 = vld [vmem:[%s3147_s1 + $0xd0] ss:$8 sps:$4 sm:$0xff]  }
  0x14   :  { %1450 = vmatpush1.bf16.msra.mxu0 %v2092_v19  ;;  %1328 = vmatprep.subr.bf16.mxu1 %v2093_v20  ;;  %v248_v60 = vrot.slane %v234_v54, %v2573_v51  ;;  %v2146_v6 = vld [vmem:[%s3147_s1 + $0x3d0] ss:$8 sps:$4 sm:$0xff]   ;;  %v2147_v7 = vld [vmem:[%s3147_s1 + $0xe4] ss:$8 sps:$4 sm:$0xff]   ;;  %v2151_v9 = vld [vmem:[%s3147_s1 + $0xe0] ss:$8 sps:$4 sm:$0xff]  }
  0x15   :  { %1451 = vmatprep.subr.bf16.mxu0 %v2095_v21  ;;  %v249_v59 = vcombine.high %v241_v55, %v241_v55  ;;  %v2149_v8 = vld [vmem:[%s3147_s1 + $0x3e4] ss:$8 sps:$4 sm:$0xff]   ;;  %v2152_v10 = vld [vmem:[%s3147_s1 + $0x3e0] ss:$8 sps:$4 sm:$0xff]   ;;  %v2153_v11 = vld [vmem:[%s3147_s1 + $0xf4] ss:$8 sps:$4 sm:$0xff]   ;;  %v2653_v19 = vrot.slane %v241_v55, %v2573_v51 }
  0x16   :  { %v250_v63 = vcombine.high %v248_v60, %v248_v60  ;;  %v2155_v12 = vld [vmem:[%s3147_s1 + $0x3f4] ss:$8 sps:$4 sm:$0xff]   ;;  %v2157_v13 = vld [vmem:[%s3147_s1 + $0xf0] ss:$8 sps:$4 sm:$0xff]   ;;  %v2638_v14 = vrot.slane %v248_v60, %v2573_v51  ;;  %v2162_v16 = vld [vmem:[%s3147_s1 + $0x104] ss:$8 sps:$4 sm:$0xff]  }
  0x17   :  { %1329 = vmatpush1.bf16.msra.mxu1 %v2097_v22  ;;  %v271_v62 = vrot.slane %v249_v59, %v2573_v51  ;;  %v2158_v15 = vld [vmem:[%s3147_s1 + $0x3f0] ss:$8 sps:$4 sm:$0xff]   ;;  %v2165_v17 = vld [vmem:[%s3147_s1 + $0x404] ss:$8 sps:$4 sm:$0xff]   ;;  %v2160_v18 = vld [vmem:[%s3147_s1 + $0x100] ss:$8 sps:$4 sm:$0xff]  }
  0x18   :  { %1452 = vmatpush1.bf16.msra.mxu0 %v2098_v23  ;;  %1330 = vmatprep.subr.bf16.mxu1 %v2099_v24  ;;  %v2606_v3 = vrot.slane %v250_v63, %v2573_v51  ;;  %v280_v20 = vcombine.high %v2638_v14, %v2638_v14  ;;  %v2163_v21 = vld [vmem:[%s3147_s1 + $0x400] ss:$8 sps:$4 sm:$0xff]   ;;  %v2168_v22 = vld [vmem:[%s3147_s1 + $0x114] ss:$8 sps:$4 sm:$0xff]   ;;  %v2210_v60 = vld [vmem:[%s3147_s1 + $0x184] ss:$8 sps:$4 sm:$0xff]  }
  0x19   :  { %1453 = vmatprep.subr.bf16.mxu0 %v2101_v25  ;;  %1350 = vmatprep.mubr.bf16.mxu1 %v271_v62  ;;  %v2171_v23 = vld [vmem:[%s3147_s1 + $0x414] ss:$8 sps:$4 sm:$0xff]   ;;  %v281_v24 = vcombine.high %v271_v62, %v271_v62  ;;  %v2166_v25 = vld [vmem:[%s3147_s1 + $0x110] ss:$8 sps:$4 sm:$0xff]   ;;  %v2187_v38 = vld [vmem:[%s3147_s1 + $0x440] ss:$8 sps:$4 sm:$0xff]  }
  0x1a   :  { %v282_v5 = vcombine.high %v2606_v3, %v2606_v3  ;;  %v2192_v39 = vld [vmem:[%s3147_s1 + $0x154] ss:$8 sps:$4 sm:$0xff]   ;;  %v23_v46 = vld [vmem:[%s3146_s0 + $0x8] sm:$0x1f] }
  0x1b   :  { %1331 = vmatpush1.bf16.msra.mxu1 %v2103_v26  ;;  %v2169_v26 = vld [vmem:[%s3147_s1 + $0x410] ss:$8 sps:$4 sm:$0xff]   ;;  %v2195_v40 = vld [vmem:[%s3147_s1 + $0x454] ss:$8 sps:$4 sm:$0xff]   ;;  %v2208_v62 = vld [vmem:[%s3147_s1 + $0x180] ss:$8 sps:$4 sm:$0xff]  }
  0x1c   :  { %1454 = vmatpush1.bf16.msra.mxu0 %v2104_v27  ;;  %1332 = vmatprep.subr.bf16.mxu1 %v2105_v28  ;;  %v2174_v27 = vld [vmem:[%s3147_s1 + $0x124] ss:$8 sps:$4 sm:$0xff]   ;;  %v2204_v52 = vld [vmem:[%s3147_s1 + $0x174] ss:$8 sps:$4 sm:$0xff]   ;;  %v2211_v63 = vld [vmem:[%s3147_s1 + $0x480] ss:$8 sps:$4 sm:$0xff]  }
  0x1d   :  { %1455 = vmatprep.subr.bf16.mxu0 %v2107_v29  ;;  %1473 = vmatprep.mubr.bf16.mxu0 %v282_v5  ;;  %v2177_v28 = vld [vmem:[%s3147_s1 + $0x424] ss:$8 sps:$4 sm:$0xff]   ;;  %v2172_v29 = vld [vmem:[%s3147_s1 + $0x120] ss:$8 sps:$4 sm:$0xff]  }
  0x1e   :  { %v2222_v5 = vld [vmem:[%s3147_s1 + $0x1a4] ss:$8 sps:$4 sm:$0xff]  }
  0x1f   :  { %1333 = vmatpush1.bf16.msra.mxu1 %v2109_v30  ;;  %v2175_v30 = vld [vmem:[%s3147_s1 + $0x420] ss:$8 sps:$4 sm:$0xff]  }
  0x20   :  { %1456 = vmatpush1.bf16.msra.mxu0 %v2110_v31  ;;  %1334 = vmatprep.subr.bf16.mxu1 %v2111_v32  ;;  %v2180_v31 = vld [vmem:[%s3147_s1 + $0x134] ss:$8 sps:$4 sm:$0xff]  }
  0x21   :  { %1457 = vmatprep.subr.bf16.mxu0 %v2113_v33  ;;  %v2183_v32 = vld [vmem:[%s3147_s1 + $0x434] ss:$8 sps:$4 sm:$0xff]   ;;  %v2178_v33 = vld [vmem:[%s3147_s1 + $0x130] ss:$8 sps:$4 sm:$0xff]  }
  0x23   :  { %1335 = vmatpush1.bf16.msra.mxu1 %v2115_v34  ;;  %v2181_v34 = vld [vmem:[%s3147_s1 + $0x430] ss:$8 sps:$4 sm:$0xff]  }
  0x24   :  { %1458 = vmatpush1.bf16.msra.mxu0 %v2116_v35  ;;  %1336 = vmatprep.subr.bf16.mxu1 %v2117_v36  ;;  %v2186_v35 = vld [vmem:[%s3147_s1 + $0x144] ss:$8 sps:$4 sm:$0xff]  }
  0x25   :  { %1459 = vmatprep.subr.bf16.mxu0 %v2119_v37  ;;  %v2189_v36 = vld [vmem:[%s3147_s1 + $0x444] ss:$8 sps:$4 sm:$0xff]   ;;  %v2184_v37 = vld [vmem:[%s3147_s1 + $0x140] ss:$8 sps:$4 sm:$0xff]  }
  0x27   :  { %1337 = vmatpush1.bf16.msra.mxu1 %v2121_v41  ;;  %v2190_v41 = vld [vmem:[%s3147_s1 + $0x150] ss:$8 sps:$4 sm:$0xff]  }
  0x28   :  { %1460 = vmatpush1.bf16.msra.mxu0 %v2122_v42  ;;  %1338 = vmatprep.subr.bf16.mxu1 %v2123_v43  ;;  %v2193_v42 = vld [vmem:[%s3147_s1 + $0x450] ss:$8 sps:$4 sm:$0xff]   ;;  %v2198_v43 = vld [vmem:[%s3147_s1 + $0x164] ss:$8 sps:$4 sm:$0xff]  }
  0x29   :  { %1461 = vmatprep.subr.bf16.mxu0 %v2125_v44  ;;  %v2201_v44 = vld [vmem:[%s3147_s1 + $0x464] ss:$8 sps:$4 sm:$0xff]  }
  0x2b   :  { %1339 = vmatpush1.bf16.msra.mxu1 %v2127_v47  ;;  %v2196_v47 = vld [vmem:[%s3147_s1 + $0x160] ss:$8 sps:$4 sm:$0xff]  }
  0x2c   :  { %1462 = vmatpush1.bf16.msra.mxu0 %v2128_v48  ;;  %1340 = vmatprep.subr.bf16.mxu1 %v2129_v49  ;;  %v2199_v48 = vld [vmem:[%s3147_s1 + $0x460] ss:$8 sps:$4 sm:$0xff]   ;;  %v283_v49 = vcombine.high %v23_v46, %v23_v46 }
  0x2d   :  { %1463 = vmatprep.subr.bf16.mxu0 %v2131_v50  ;;  %v2737_v50 = vrot.slane %v23_v46, %v2573_v51  ;;  %v2277_v46 = vld [vmem:[%s3147_s1 + $0x234] ss:$8 sps:$4 sm:$0xff]  }
  0x2e   :  { %v2746_v54 = vrot.slane %v283_v49, %v2573_v51  ;;  %v2283_v49 = vld [vmem:[%s3147_s1 + $0x244] ss:$8 sps:$4 sm:$0xff]  }
  0x2f   :  { %1341 = vmatpush1.bf16.msra.mxu1 %v2133_v53  ;;  %v2207_v53 = vld [vmem:[%s3147_s1 + $0x474] ss:$8 sps:$4 sm:$0xff]   ;;  %v298_v55 = vcombine.high %v2737_v50, %v2737_v50 }
  0x30   :  { %1464 = vmatpush1.bf16.msra.mxu0 %v2134_v56  ;;  %1342 = vmatprep.subr.bf16.mxu1 %v2135_v57  ;;  %v2202_v56 = vld [vmem:[%s3147_s1 + $0x170] ss:$8 sps:$4 sm:$0xff]   ;;  %v312_v59 = vrot.slane %v2746_v54, %v2573_v51 }
  0x31   :  { %1465 = vmatprep.subr.bf16.mxu0 %v2137_v58  ;;  %v2205_v57 = vld [vmem:[%s3147_s1 + $0x470] ss:$8 sps:$4 sm:$0xff]   ;;  %v2757_v58 = vrot.slane %v298_v55, %v2573_v51 }
  0x33   :  { %1343 = vmatpush1.bf16.msra.mxu1 %v2139_v61  ;;  %v2213_v61 = vld [vmem:[%s3147_s1 + $0x484] ss:$8 sps:$4 sm:$0xff]  }
  0x34   :  { %1466 = vmatpush1.bf16.msra.mxu0 %v2140_v0  ;;  %1344 = vmatprep.subr.bf16.mxu1 %v2141_v1  ;;  %v2216_v0 = vld [vmem:[%s3147_s1 + $0x194] ss:$8 sps:$4 sm:$0xff]  }
  0x35   :  { %1467 = vmatprep.subr.bf16.mxu0 %v2143_v2  ;;  %v2219_v1 = vld [vmem:[%s3147_s1 + $0x494] ss:$8 sps:$4 sm:$0xff]   ;;  %v2214_v2 = vld [vmem:[%s3147_s1 + $0x190] ss:$8 sps:$4 sm:$0xff]  }
  0x37   :  { %1345 = vmatpush1.bf16.msra.mxu1 %v2145_v4  ;;  %v2217_v4 = vld [vmem:[%s3147_s1 + $0x490] ss:$8 sps:$4 sm:$0xff]  }
  0x38   :  { %1468 = vmatpush1.bf16.msra.mxu0 %v2146_v6  ;;  %1346 = vmatprep.subr.bf16.mxu1 %v2147_v7  ;;  %v2225_v6 = vld [vmem:[%s3147_s1 + $0x4a4] ss:$8 sps:$4 sm:$0xff]   ;;  %v2220_v7 = vld [vmem:[%s3147_s1 + $0x1a0] ss:$8 sps:$4 sm:$0xff]  }
  0x39   :  { %1469 = vmatprep.subr.bf16.mxu0 %v2149_v8  ;;  %v2223_v8 = vld [vmem:[%s3147_s1 + $0x4a0] ss:$8 sps:$4 sm:$0xff]  }
  0x3b   :  { %1347 = vmatpush1.bf16.msra.mxu1 %v2151_v9  ;;  %v2228_v9 = vld [vmem:[%s3147_s1 + $0x1b4] ss:$8 sps:$4 sm:$0xff]  }
  0x3c   :  { %1470 = vmatpush1.bf16.msra.mxu0 %v2152_v10  ;;  %1348 = vmatprep.subr.bf16.mxu1 %v2153_v11  ;;  %v2231_v10 = vld [vmem:[%s3147_s1 + $0x4b4] ss:$8 sps:$4 sm:$0xff]   ;;  %v2226_v11 = vld [vmem:[%s3147_s1 + $0x1b0] ss:$8 sps:$4 sm:$0xff]  }
  0x3d   :  { %1471 = vmatprep.subr.bf16.mxu0 %v2155_v12  ;;  %v2229_v12 = vld [vmem:[%s3147_s1 + $0x4b0] ss:$8 sps:$4 sm:$0xff]  }
  0x3f   :  { %1349 = vmatpush1.bf16.msra.mxu1 %v2157_v13  ;;  %v2234_v13 = vld [vmem:[%s3147_s1 + $0x1c4] ss:$8 sps:$4 sm:$0xff]  }
  0x40   :  { %1472 = vmatpush1.bf16.msra.mxu0 %v2158_v15  ;;  %1359 = vmatprep.subr.bf16.mxu1 %v2162_v16  ;;  %v2237_v15 = vld [vmem:[%s3147_s1 + $0x4c4] ss:$8 sps:$4 sm:$0xff]   ;;  %v2232_v16 = vld [vmem:[%s3147_s1 + $0x1c0] ss:$8 sps:$4 sm:$0xff]  }
  0x41   :  { %1482 = vmatprep.subr.bf16.mxu0 %v2165_v17  ;;  %v2235_v17 = vld [vmem:[%s3147_s1 + $0x4c0] ss:$8 sps:$4 sm:$0xff]  }
  0x42   :  { %1351 = vmatmul.mubr.bf16.vlgmr.msra.gmra.mrb[0].mxu1 %v2653_v19 }
  0x43   :  { %1474 = vmatmul.mubr.bf16.vlgmr.msra.gmra.mrb[0].mxu0 %v280_v20  ;;  %1360 = vmatpush1.bf16.msra.mxu1 %v2160_v18  ;;  %v2240_v18 = vld [vmem:[%s3147_s1 + $0x1d4] ss:$8 sps:$4 sm:$0xff]  }
  0x44   :  { %1483 = vmatpush1.bf16.msra.mxu0 %v2163_v21  ;;  %1361 = vmatprep.subr.bf16.mxu1 %v2168_v22  ;;  %v2243_v20 = vld [vmem:[%s3147_s1 + $0x4d4] ss:$8 sps:$4 sm:$0xff]   ;;  %v2238_v21 = vld [vmem:[%s3147_s1 + $0x1d0] ss:$8 sps:$4 sm:$0xff]  }
  0x45   :  { %1484 = vmatprep.subr.bf16.mxu0 %v2171_v23  ;;  %1391 = vmatprep.mubr.bf16.mxu1 %v281_v24  ;;  %v2241_v22 = vld [vmem:[%s3147_s1 + $0x4d0] ss:$8 sps:$4 sm:$0xff]   ;;  %v2246_v23 = vld [vmem:[%s3147_s1 + $0x1e4] ss:$8 sps:$4 sm:$0xff]  }
  0x46   :  { %1514 = vmatprep.mubr.bf16.mxu0 %v2757_v58  ;;  %v2249_v24 = vld [vmem:[%s3147_s1 + $0x4e4] ss:$8 sps:$4 sm:$0xff]  }
  0x47   :  { %1362 = vmatpush1.bf16.msra.mxu1 %v2166_v25  ;;  %v2244_v25 = vld [vmem:[%s3147_s1 + $0x1e0] ss:$8 sps:$4 sm:$0xff]  }
  0x48   :  { %1485 = vmatpush1.bf16.msra.mxu0 %v2169_v26  ;;  %1363 = vmatprep.subr.bf16.mxu1 %v2174_v27  ;;  %v2247_v26 = vld [vmem:[%s3147_s1 + $0x4e0] ss:$8 sps:$4 sm:$0xff]   ;;  %v2252_v27 = vld [vmem:[%s3147_s1 + $0x1f4] ss:$8 sps:$4 sm:$0xff]  }
  0x49   :  { %1486 = vmatprep.subr.bf16.mxu0 %v2177_v28  ;;  %v2255_v28 = vld [vmem:[%s3147_s1 + $0x4f4] ss:$8 sps:$4 sm:$0xff]  }
  0x4b   :  { %1364 = vmatpush1.bf16.msra.mxu1 %v2172_v29  ;;  %v2250_v29 = vld [vmem:[%s3147_s1 + $0x1f0] ss:$8 sps:$4 sm:$0xff]  }
  0x4c   :  { %1487 = vmatpush1.bf16.msra.mxu0 %v2175_v30  ;;  %1365 = vmatprep.subr.bf16.mxu1 %v2180_v31  ;;  %v2253_v30 = vld [vmem:[%s3147_s1 + $0x4f0] ss:$8 sps:$4 sm:$0xff]   ;;  %v2258_v31 = vld [vmem:[%s3147_s1 + $0x204] ss:$8 sps:$4 sm:$0xff]  }
  0x4d   :  { %1488 = vmatprep.subr.bf16.mxu0 %v2183_v32  ;;  %v2262_v32 = vld [vmem:[%s3147_s1 + $0x504] ss:$8 sps:$4 sm:$0xff]  }
  0x4f   :  { %1366 = vmatpush1.bf16.msra.mxu1 %v2178_v33  ;;  %v279_v33 = vcombine.high %v2653_v19, %v2653_v19  ;;  %v2265_v19 = vld [vmem:[%s3147_s1 + $0x214] ss:$8 sps:$4 sm:$0xff]  }
  0x50   :  { %1489 = vmatpush1.bf16.msra.mxu0 %v2181_v34  ;;  %1367 = vmatprep.subr.bf16.mxu1 %v2186_v35  ;;  %v2868_v34 = vrot.slane %v2737_v50, %v2573_v51  ;;  %v2256_v35 = vld [vmem:[%s3147_s1 + $0x200] ss:$8 sps:$4 sm:$0xff]   ;;  %v2286_v50 = vld [vmem:[%s3147_s1 + $0x544] ss:$8 sps:$4 sm:$0xff]  }
  0x51   :  { %1490 = vmatprep.subr.bf16.mxu0 %v2189_v36  ;;  %v2260_v36 = vld [vmem:[%s3147_s1 + $0x500] ss:$8 sps:$4 sm:$0xff]  }
  0x53   :  { %1368 = vmatpush1.bf16.msra.mxu1 %v2184_v37  ;;  %v2268_v37 = vld [vmem:[%s3147_s1 + $0x514] ss:$8 sps:$4 sm:$0xff]  }
  0x54   :  { %1491 = vmatpush1.bf16.msra.mxu0 %v2187_v38  ;;  %1369 = vmatprep.subr.bf16.mxu1 %v2192_v39  ;;  %v2263_v38 = vld [vmem:[%s3147_s1 + $0x210] ss:$8 sps:$4 sm:$0xff]   ;;  %v321_v39 = vcombine.high %v2757_v58, %v2757_v58 }
  0x55   :  { %1492 = vmatprep.subr.bf16.mxu0 %v2195_v40  ;;  %v2266_v40 = vld [vmem:[%s3147_s1 + $0x510] ss:$8 sps:$4 sm:$0xff]  }
  0x57   :  { %1370 = vmatpush1.bf16.msra.mxu1 %v2190_v41  ;;  %v2271_v41 = vld [vmem:[%s3147_s1 + $0x224] ss:$8 sps:$4 sm:$0xff]  }
  0x58   :  { %1493 = vmatpush1.bf16.msra.mxu0 %v2193_v42  ;;  %1371 = vmatprep.subr.bf16.mxu1 %v2198_v43  ;;  %v2274_v42 = vld [vmem:[%s3147_s1 + $0x524] ss:$8 sps:$4 sm:$0xff]   ;;  %v2269_v43 = vld [vmem:[%s3147_s1 + $0x220] ss:$8 sps:$4 sm:$0xff]  }
  0x59   :  { %1494 = vmatprep.subr.bf16.mxu0 %v2201_v44  ;;  %v2272_v44 = vld [vmem:[%s3147_s1 + $0x520] ss:$8 sps:$4 sm:$0xff]  }
  0x5b   :  { %1372 = vmatpush1.bf16.msra.mxu1 %v2196_v47  ;;  %v2275_v47 = vld [vmem:[%s3147_s1 + $0x230] ss:$8 sps:$4 sm:$0xff]  }
  0x5c   :  { %1495 = vmatpush1.bf16.msra.mxu0 %v2199_v48  ;;  %1373 = vmatprep.subr.bf16.mxu1 %v2204_v52  ;;  %v2278_v48 = vld [vmem:[%s3147_s1 + $0x530] ss:$8 sps:$4 sm:$0xff]   ;;  %v2281_v52 = vld [vmem:[%s3147_s1 + $0x240] ss:$8 sps:$4 sm:$0xff]  }
  0x5d   :  { %1496 = vmatprep.subr.bf16.mxu0 %v2207_v53  ;;  %v2284_v53 = vld [vmem:[%s3147_s1 + $0x540] ss:$8 sps:$4 sm:$0xff]  }
  0x5f   :  { %1374 = vmatpush1.bf16.msra.mxu1 %v2202_v56 }
  0x60   :  { %1497 = vmatpush1.bf16.msra.mxu0 %v2205_v57  ;;  %1375 = vmatprep.subr.bf16.mxu1 %v2210_v60 }
  0x61   :  { %1498 = vmatprep.subr.bf16.mxu0 %v2213_v61 }
  0x63   :  { %1376 = vmatpush1.bf16.msra.mxu1 %v2208_v62 }
  0x64   :  { %1499 = vmatpush1.bf16.msra.mxu0 %v2211_v63  ;;  %1377 = vmatprep.subr.bf16.mxu1 %v2216_v0 }
  0x65   :  { %1500 = vmatprep.subr.bf16.mxu0 %v2219_v1 }
  0x67   :  { %1378 = vmatpush1.bf16.msra.mxu1 %v2214_v2 }
  0x68   :  { %1501 = vmatpush1.bf16.msra.mxu0 %v2217_v4  ;;  %1379 = vmatprep.subr.bf16.mxu1 %v2222_v5 }
  0x69   :  { %1502 = vmatprep.subr.bf16.mxu0 %v2225_v6 }
  0x6b   :  { %1380 = vmatpush1.bf16.msra.mxu1 %v2220_v7 }
  0x6c   :  { %1503 = vmatpush1.bf16.msra.mxu0 %v2223_v8  ;;  %1381 = vmatprep.subr.bf16.mxu1 %v2228_v9 }
  0x6d   :  { %1504 = vmatprep.subr.bf16.mxu0 %v2231_v10 }
  0x6f   :  { %1382 = vmatpush1.bf16.msra.mxu1 %v2226_v11 }
  0x70   :  { %1505 = vmatpush1.bf16.msra.mxu0 %v2229_v12  ;;  %1383 = vmatprep.subr.bf16.mxu1 %v2234_v13 }
  0x71   :  { %1506 = vmatprep.subr.bf16.mxu0 %v2237_v15 }
  0x73   :  { %1384 = vmatpush1.bf16.msra.mxu1 %v2232_v16 }
  0x74   :  { %1507 = vmatpush1.bf16.msra.mxu0 %v2235_v17  ;;  %1385 = vmatprep.subr.bf16.mxu1 %v2240_v18 }
  0x75   :  { %1508 = vmatprep.subr.bf16.mxu0 %v2243_v20 }
  0x77   :  { %1386 = vmatpush1.bf16.msra.mxu1 %v2238_v21 }
  0x78   :  { %1509 = vmatpush1.bf16.msra.mxu0 %v2241_v22  ;;  %1387 = vmatprep.subr.bf16.mxu1 %v2246_v23 }
  0x79   :  { %1510 = vmatprep.subr.bf16.mxu0 %v2249_v24 }
  0x7b   :  { %1388 = vmatpush1.bf16.msra.mxu1 %v2244_v25 }
  0x7c   :  { %1511 = vmatpush1.bf16.msra.mxu0 %v2247_v26  ;;  %1389 = vmatprep.subr.bf16.mxu1 %v2252_v27 }
  0x7d   :  { %1512 = vmatprep.subr.bf16.mxu0 %v2255_v28 }
  0x7f   :  { %1390 = vmatpush1.bf16.msra.mxu1 %v2250_v29 }
  0x80   :  { %1513 = vmatpush1.bf16.msra.mxu0 %v2253_v30  ;;  %1400 = vmatprep.subr.bf16.mxu1 %v2258_v31 }
  0x81   :  { %1523 = vmatprep.subr.bf16.mxu0 %v2262_v32 }
  0x82   :  { %1392 = vmatmul.mubr.bf16.vlgmr.msra.gmra.mrb[0].mxu1 %v279_v33 }
  0x83   :  { %1515 = vmatmul.mubr.bf16.vlgmr.msra.gmra.mrb[0].mxu0 %v2868_v34  ;;  %1401 = vmatpush1.bf16.msra.mxu1 %v2256_v35 }
  0x84   :  { %1524 = vmatpush1.bf16.msra.mxu0 %v2260_v36  ;;  %1402 = vmatprep.subr.bf16.mxu1 %v2265_v19 }
  0x85   :  { %1525 = vmatprep.subr.bf16.mxu0 %v2268_v37  ;;  %1432 = vmatprep.mubr.bf16.mxu1 %v2606_v3  ;;  %v2280_v3 = vld [vmem:[%s3147_s1 + $0x534] ss:$8 sps:$4 sm:$0xff]  }
  0x86   :  { %1555 = vmatprep.mubr.bf16.mxu0 %v321_v39 }
  0x87   :  { %1403 = vmatpush1.bf16.msra.mxu1 %v2263_v38 }
  0x88   :  { %1526 = vmatpush1.bf16.msra.mxu0 %v2266_v40  ;;  %1404 = vmatprep.subr.bf16.mxu1 %v2271_v41 }
  0x89   :  { %1527 = vmatprep.subr.bf16.mxu0 %v2274_v42 }
  0x8b   :  { %1405 = vmatpush1.bf16.msra.mxu1 %v2269_v43 }
  0x8c   :  { %1528 = vmatpush1.bf16.msra.mxu0 %v2272_v44  ;;  %1406 = vmatprep.subr.bf16.mxu1 %v2277_v46 }
  0x8d   :  { %1529 = vmatprep.subr.bf16.mxu0 %v2280_v3 }
  0x8f   :  { %1407 = vmatpush1.bf16.msra.mxu1 %v2275_v47 }
  0x90   :  { %1530 = vmatpush1.bf16.msra.mxu0 %v2278_v48 }
  0x91   :  { %10 = vsyncpa [#allocation3], 0  ;;  %1408 = vmatprep.subr.bf16.mxu1 %v2283_v49  ;;  %1531 = vmatprep.subr.bf16.mxu0 %v2286_v50  ;;  %v2289_v55 = vld [vmem:[%s3147_s1 + $0x254] ss:$8 sps:$4 sm:$0xff]   ;;  %v2287_v57 = vld [vmem:[%s3147_s1 + $0x250] ss:$8 sps:$4 sm:$0xff]   ;;  %v320_v41 = vcombine.high %v2868_v34, %v2868_v34 }
  0x92   :  { %v2292_v56 = vld [vmem:[%s3147_s1 + $0x554] ss:$8 sps:$4 sm:$0xff]   ;;  %v2290_v58 = vld [vmem:[%s3147_s1 + $0x550] ss:$8 sps:$4 sm:$0xff]   ;;  %v2295_v60 = vld [vmem:[%s3147_s1 + $0x264] ss:$8 sps:$4 sm:$0xff]  }
  0x93   :  { %1409 = vmatpush1.bf16.msra.mxu1 %v2281_v52  ;;  %v2298_v61 = vld [vmem:[%s3147_s1 + $0x564] ss:$8 sps:$4 sm:$0xff]   ;;  %v2293_v62 = vld [vmem:[%s3147_s1 + $0x260] ss:$8 sps:$4 sm:$0xff]   ;;  %v2301_v0 = vld [vmem:[%s3147_s1 + $0x274] ss:$8 sps:$4 sm:$0xff]  }
  0x94   :  { %1532 = vmatpush1.bf16.msra.mxu0 %v2284_v53  ;;  %1410 = vmatprep.subr.bf16.mxu1 %v2289_v55  ;;  %v2296_v63 = vld [vmem:[%s3147_s1 + $0x560] ss:$8 sps:$4 sm:$0xff]   ;;  %v2304_v1 = vld [vmem:[%s3147_s1 + $0x574] ss:$8 sps:$4 sm:$0xff]   ;;  %v2299_v2 = vld [vmem:[%s3147_s1 + $0x270] ss:$8 sps:$4 sm:$0xff]  }
  0x95   :  { %1533 = vmatprep.subr.bf16.mxu0 %v2292_v56  ;;  %v2302_v4 = vld [vmem:[%s3147_s1 + $0x570] ss:$8 sps:$4 sm:$0xff]   ;;  %v2307_v5 = vld [vmem:[%s3147_s1 + $0x284] ss:$8 sps:$4 sm:$0xff]   ;;  %v2305_v7 = vld [vmem:[%s3147_s1 + $0x280] ss:$8 sps:$4 sm:$0xff]  }
  0x96   :  { %v2310_v6 = vld [vmem:[%s3147_s1 + $0x584] ss:$8 sps:$4 sm:$0xff]   ;;  %v2308_v8 = vld [vmem:[%s3147_s1 + $0x580] ss:$8 sps:$4 sm:$0xff]   ;;  %v2313_v9 = vld [vmem:[%s3147_s1 + $0x294] ss:$8 sps:$4 sm:$0xff]  }
  0x97   :  { %1411 = vmatpush1.bf16.msra.mxu1 %v2287_v57  ;;  %v2316_v10 = vld [vmem:[%s3147_s1 + $0x594] ss:$8 sps:$4 sm:$0xff]   ;;  %v2311_v11 = vld [vmem:[%s3147_s1 + $0x290] ss:$8 sps:$4 sm:$0xff]   ;;  %v2319_v13 = vld [vmem:[%s3147_s1 + $0x2a4] ss:$8 sps:$4 sm:$0xff]  }
  0x98   :  { %1534 = vmatpush1.bf16.msra.mxu0 %v2290_v58  ;;  %1412 = vmatprep.subr.bf16.mxu1 %v2295_v60  ;;  %v2314_v12 = vld [vmem:[%s3147_s1 + $0x590] ss:$8 sps:$4 sm:$0xff]   ;;  %v2322_v15 = vld [vmem:[%s3147_s1 + $0x5a4] ss:$8 sps:$4 sm:$0xff]   ;;  %v2317_v16 = vld [vmem:[%s3147_s1 + $0x2a0] ss:$8 sps:$4 sm:$0xff]  }
  0x99   :  { %1535 = vmatprep.subr.bf16.mxu0 %v2298_v61  ;;  %v2320_v17 = vld [vmem:[%s3147_s1 + $0x5a0] ss:$8 sps:$4 sm:$0xff]   ;;  %v2325_v18 = vld [vmem:[%s3147_s1 + $0x2b4] ss:$8 sps:$4 sm:$0xff]   ;;  %v2323_v21 = vld [vmem:[%s3147_s1 + $0x2b0] ss:$8 sps:$4 sm:$0xff]  }
  0x9a   :  { %v2328_v20 = vld [vmem:[%s3147_s1 + $0x5b4] ss:$8 sps:$4 sm:$0xff]   ;;  %v2326_v22 = vld [vmem:[%s3147_s1 + $0x5b0] ss:$8 sps:$4 sm:$0xff]   ;;  %v2331_v23 = vld [vmem:[%s3147_s1 + $0x2c4] ss:$8 sps:$4 sm:$0xff]  }
  0x9b   :  { %1413 = vmatpush1.bf16.msra.mxu1 %v2293_v62  ;;  %v2334_v24 = vld [vmem:[%s3147_s1 + $0x5c4] ss:$8 sps:$4 sm:$0xff]   ;;  %v2329_v25 = vld [vmem:[%s3147_s1 + $0x2c0] ss:$8 sps:$4 sm:$0xff]   ;;  %v2337_v27 = vld [vmem:[%s3147_s1 + $0x2d4] ss:$8 sps:$4 sm:$0xff]  }
  0x9c   :  { %1536 = vmatpush1.bf16.msra.mxu0 %v2296_v63  ;;  %1414 = vmatprep.subr.bf16.mxu1 %v2301_v0  ;;  %v2332_v26 = vld [vmem:[%s3147_s1 + $0x5c0] ss:$8 sps:$4 sm:$0xff]   ;;  %v2340_v28 = vld [vmem:[%s3147_s1 + $0x5d4] ss:$8 sps:$4 sm:$0xff]   ;;  %v2335_v29 = vld [vmem:[%s3147_s1 + $0x2d0] ss:$8 sps:$4 sm:$0xff]  }
  0x9d   :  { %1537 = vmatprep.subr.bf16.mxu0 %v2304_v1  ;;  %v2338_v30 = vld [vmem:[%s3147_s1 + $0x5d0] ss:$8 sps:$4 sm:$0xff]   ;;  %v2343_v31 = vld [vmem:[%s3147_s1 + $0x2e4] ss:$8 sps:$4 sm:$0xff]   ;;  %v2341_v33 = vld [vmem:[%s3147_s1 + $0x2e0] ss:$8 sps:$4 sm:$0xff]  }
  0x9e   :  { %v2346_v32 = vld [vmem:[%s3147_s1 + $0x5e4] ss:$8 sps:$4 sm:$0xff]   ;;  %v2344_v35 = vld [vmem:[%s3147_s1 + $0x5e0] ss:$8 sps:$4 sm:$0xff]   ;;  %v2349_v36 = vld [vmem:[%s3147_s1 + $0x2f4] ss:$8 sps:$4 sm:$0xff]  }
  0x9f   :  { %1415 = vmatpush1.bf16.msra.mxu1 %v2299_v2  ;;  %v2352_v19 = vld [vmem:[%s3147_s1 + $0x5f4] ss:$8 sps:$4 sm:$0xff]   ;;  %v2347_v37 = vld [vmem:[%s3147_s1 + $0x2f0] ss:$8 sps:$4 sm:$0xff]   ;;  %v2355_v39 = vld [vmem:[%s3147_s1 + $0x604] ss:$8 sps:$4 sm:$0xff]  }
  0xa0   :  { %1538 = vmatpush1.bf16.msra.mxu0 %v2302_v4  ;;  %1416 = vmatprep.subr.bf16.mxu1 %v2307_v5  ;;  %v2350_v38 = vld [vmem:[%s3147_s1 + $0x5f0] ss:$8 sps:$4 sm:$0xff]   ;;  %v2359_v40 = vld [vmem:[%s3149_s3 + $0x40] sm:$0xff]   ;;  %v2358_v43 = vld [vmem:[%s3147_s1 + $0x614] ss:$8 sps:$4 sm:$0xff]   ;;  %v2400_v3 = vmov 0  }
  0xa1   :  { %1539 = vmatprep.subr.bf16.mxu0 %v2310_v6  ;;  %v2353_v42 = vld [vmem:[%s3147_s1 + $0x600] ss:$8 sps:$4 sm:$0xff]   ;;  %v2356_v46 = vld [vmem:[%s3147_s1 + $0x610] ss:$8 sps:$4 sm:$0xff]   ;;  %vm1314_vm0 = vcmask 261120   ;;  %v224_v62 = vsub.s32 0, %v2558_v45 }
  0xa2   :  { %v2360_v44 = vld [vmem:[%s3149_s3] sm:$0xff]   ;;  %v2361_v34 = vld [vmem:[%s3149_s3 + $0x48] sm:$0xff]   ;;  %v2363_v48 = vld [vmem:[%s3149_s3 + $0x50] sm:$0xff]   ;;  %v228_v1 = vsub.s32 1, %v2558_v45  ;;  %s2401_s12 = smov [#allocation2]   ;;  %vm1784_vm1 = vcmask 74752  }
  0xa3   :  { %1417 = vmatpush1.bf16.msra.mxu1 %v2305_v7  ;;  %v2362_v47 = vld [vmem:[%s3149_s3 + $0x8] sm:$0xff]   ;;  %v2365_v49 = vld [vmem:[%s3149_s3 + $0x58] sm:$0xff]   ;;  %v2367_v52 = vld [vmem:[%s3149_s3 + $0x60] sm:$0xff]   ;;  %s1792_s13 = sshll.u32 %s2401_s12, 4  ;;  %s1793_s13 = int_to_ptr.vmem [resolvable:$true] %s1792_s13 }
  0xa4   :  { %1540 = vmatpush1.bf16.msra.mxu0 %v2308_v8  ;;  %1418 = vmatprep.subr.bf16.mxu1 %v2313_v9  ;;  %v2366_v50 = vld [vmem:[%s3149_s3 + $0x18] sm:$0xff]   ;;  %v2368_v53 = vld [vmem:[%s3149_s3 + $0x20] sm:$0xff]   ;;  %v2369_v51 = vld [vmem:[%s3149_s3 + $0x68] sm:$0xff]   ;;  %s2375_s14 = scalar_lea.vmem %s1793_s13, 32  ;;  %p2380_p1 = scmp.lt.s32.totalorder %s1793_s13, %s1793_s13 }
  0xa5   :  { %1541 = vmatprep.subr.bf16.mxu0 %v2316_v10  ;;  %v2370_v54 = vld [vmem:[%s3149_s3 + $0x28] sm:$0xff]   ;;  %v2372_v55 = vld [vmem:[%s3149_s3 + $0x30] sm:$0xff]   ;;  %v2373_v56 = vld [vmem:[%s3149_s3 + $0x78] sm:$0xff]   ;;  %p2376_p0 = scmp.ne.s32.totalorder %s1793_s13, %s2375_s14  ;;  %p2381_p2 = scmp.lt.s32.totalorder %s2375_s14, %s2375_s14 }
  0xa6   :  { %v2374_v57 = vld [vmem:[%s3149_s3 + $0x38] sm:$0xff]   ;;  %v220_v0 = vld [vmem:[%s3148_s2] sm:$0x3] }
  0xa7   :  { %1419 = vmatpush1.bf16.msra.mxu1 %v2311_v11  ;;  %v225_v2 = vrot.slane %v220_v0, %v224_v62  ;;  %v229_v4 = vrot.slane %v220_v0, %v228_v1  ;;  %v1997_v45 = vld [vmem:[%s3150_s4] ss:$0 sm:$0xff]  ;;  %p2382_p3 = por %p2381_p2, %p2380_p1 }
  0xa8   :  { %1542 = vmatpush1.bf16.msra.mxu0 %v2314_v12  ;;  %1420 = vmatprep.subr.bf16.mxu1 %v2319_v13 }
  0xa9   :  { %1543 = vmatprep.subr.bf16.mxu0 %v2322_v15  ;;  %p2383_p4 = pnand %p2382_p3, %p2376_p0 }
  0xab   :  { %1421 = vmatpush1.bf16.msra.mxu1 %v2317_v16 }
  0xac   :  { %1544 = vmatpush1.bf16.msra.mxu0 %v2320_v17  ;;  %1422 = vmatprep.subr.bf16.mxu1 %v2325_v18 }
  0xad   :  { %1545 = vmatprep.subr.bf16.mxu0 %v2328_v20 }
  0xaf   :  { %1423 = vmatpush1.bf16.msra.mxu1 %v2323_v21 }
  0xb0   :  { %1546 = vmatpush1.bf16.msra.mxu0 %v2326_v22  ;;  %1424 = vmatprep.subr.bf16.mxu1 %v2331_v23 }
  0xb1   :  { %1547 = vmatprep.subr.bf16.mxu0 %v2334_v24 }
  0xb3   :  { %1425 = vmatpush1.bf16.msra.mxu1 %v2329_v25 }
  0xb4   :  { %1548 = vmatpush1.bf16.msra.mxu0 %v2332_v26  ;;  %1426 = vmatprep.subr.bf16.mxu1 %v2337_v27 }
  0xb5   :  { %1549 = vmatprep.subr.bf16.mxu0 %v2340_v28 }
  0xb7   :  { %1427 = vmatpush1.bf16.msra.mxu1 %v2335_v29 }
  0xb8   :  { %1550 = vmatpush1.bf16.msra.mxu0 %v2338_v30  ;;  %1428 = vmatprep.subr.bf16.mxu1 %v2343_v31 }
  0xb9   :  { %1551 = vmatprep.subr.bf16.mxu0 %v2346_v32 }
  0xbb   :  { %1429 = vmatpush1.bf16.msra.mxu1 %v2341_v33 }
  0xbc   :  { %1552 = vmatpush1.bf16.msra.mxu0 %v2344_v35  ;;  %1430 = vmatprep.subr.bf16.mxu1 %v2349_v36 }
  0xbd   :  { %1553 = vmatprep.subr.bf16.mxu0 %v2352_v19 }
  0xbf   :  { %1431 = vmatpush1.bf16.msra.mxu1 %v2347_v37 }
  0xc0   :  { %1554 = vmatpush1.bf16.msra.mxu0 %v2350_v38  ;;  %2014 = vmatprep.subr.bf16.mxu1 %v2359_v40 }
  0xc1   :  { %1564 = vmatprep.subr.bf16.mxu0 %v2355_v39 }
  0xc2   :  { %1433 = vmatmul.mubr.bf16.vlgmr.msra.gmra.mrb[0].mxu1 %v2638_v14  ;;  %v2364_v14 = vld [vmem:[%s3149_s3 + $0x10] sm:$0xff]  }
  0xc3   :  { %1556 = vmatmul.mubr.bf16.vlgmr.msra.gmra.mrb[0].mxu0 %v320_v41  ;;  %2015 = vmatpush3.bf16.msra.mxu1 %v2360_v44 }
  0xc4   :  { %1565 = vmatpush1.bf16.msra.mxu0 %v2353_v42  ;;  %1596 = vmatprep.mubr.bf16.mxu0 %v2400_v3 }
  0xc5   :  { %1566 = vmatprep.subr.bf16.mxu0 %v2358_v43  ;;  %2016 = vmatprep.subr.bf16.mxu1 %v2361_v34 }
  0xc7   :  { %2017 = vmatpush3.bf16.msra.mxu1 %v2362_v47 }
  0xc8   :  { %1567 = vmatpush1.bf16.msra.mxu0 %v2356_v46  ;;  %2018 = vmatprep.subr.bf16.mxu1 %v2363_v48 }
  0xcb   :  { %2019 = vmatpush3.bf16.msra.mxu1 %v2364_v14 }
  0xcc   :  { %2020 = vmatprep.subr.bf16.mxu1 %v2365_v49 }
  0xcf   :  { %1996 = vmatmul.mubr.msk.bf16.vlgmr.msra.gmra.mrb[0].mxu0 %vm1314_vm0, %v312_v59  ;;  %2021 = vmatpush3.bf16.msra.mxu1 %v2366_v50  ;;  %v2371_v59 = vld [vmem:[%s3149_s3 + $0x70] sm:$0xff]  }
  0xd0   :  { %2022 = vmatprep.subr.bf16.mxu1 %v2367_v52 }
  0xd3   :  { %2023 = vmatpush3.bf16.msra.mxu1 %v2368_v53 }
  0xd4   :  { %2024 = vmatprep.subr.bf16.mxu1 %v2369_v51 }
  0xd7   :  { %2025 = vmatpush3.bf16.msra.mxu1 %v2370_v54 }
  0xd8   :  { %2026 = vmatprep.subr.bf16.mxu1 %v2371_v59 }
  0xdb   :  { %2027 = vmatpush3.bf16.msra.mxu1 %v2372_v55 }
  0xdc   :  { %2028 = vmatprep.subr.bf16.mxu1 %v2373_v56 }
  0xdf   :  { %2029 = vmatpush3.bf16.msra.mxu1 %v2374_v57 }
 0x195   :  { %v1434_v58 = vpop.f32.mrb[0].mxu1 }
 0x196   :  { %v1436_v60 = vpop.f32.mrb[1].mxu1  ;;  %v2036_v5 = vadd.f32 %v1434_v58, %v225_v2 }
 0x197   :  { %v1438_v61 = vpop.f32.mrb[2].mxu1  ;;  %v2038_v6 = vadd.f32 %v1436_v60, %v229_v4 }
 0x198   :  { %v1439_v63 = vpop.f32.mrb[3].mxu1 }
 0x1a2   :  { %v1598_v7 = vpop.f32.mrb[0].mxu0 }
 0x1a3   :  { %v2037_v8 = vadd.f32 %v2036_v5, %v1598_v7  ;;  %v1600_v9 = vpop.f32.mrb[1].mxu0 }
 0x1a4   :  { %v2039_v10 = vadd.f32 %v2038_v6, %v1600_v9  ;;  %v1602_v11 = vpop.f32.mrb[2].mxu0 }
 0x1a5   :  { %v1605_v12 = vmax.f32 %v2037_v8, 0.0  ;;  %v1603_v13 = vpop.f32.mrb[3].mxu0 }
 0x1a6   :  { %v1606_v15 = vmax.f32 %v2039_v10, 0.0 }
 0x1a7   :  { %v1607_v17 = vpack.c.bf16 %v1605_v12, %v1605_v12 }
 0x1a8   :  { %v1608_v16 = vpack.c.bf16 %v1606_v15, %v1606_v15 }
 0x1aa   :  { %1776 = vmatprep.mubr.bf16.mxu1 %v1608_v16 }
 0x1ab   :  { %1777 = vmatmul.mubr.bf16.vlgmr.msra.gmra.mrb[4].mxu1 %v1607_v17 }
 0x27e   :  { %v2030_v18 = vpop.f32.mrb[4].mxu1 }
 0x27f   :  { %v2031_v20 = vpop.f32.mrb[5].mxu1 }
 0x280   :  { %v2032_v21 = vadd.f32 %v2031_v20, %v2030_v18  ;;  %v2033_v22 = vpop.f32.mrb[6].mxu1 }
 0x281   :  { %v2034_v23 = vpop.f32.mrb[7].mxu1 }
 0x282   :  { %v1779_v24 = vadd.f32 %v2032_v21, %v1997_v45 }
 0x284   :  { %1785 = vst.msk [vmem:[#allocation2] sm:$0x3] %vm1784_vm1, %v1779_v24 }
 0x285   :  { %2386 = shalt.err (!%p2383_p4)
}
 0x286   :  { %s2387_s4 = scalar_lea.hbm %s3151_s5, 32 }
 0x287   :  { %p2388_p5 = scmp.ne.s32.totalorder %s3151_s5, %s2387_s4  ;;  %p2391_p6 = scmp.lt.u32.totalorder %s2387_s4, %s3151_s5 }
 0x289   :  { %p2393_p7 = pnand %p2391_p6, %p2388_p5 }
 0x28b   :  { %2396 = shalt.err (!%p2393_p7)
}
 0x28c   :  { %1795 = dma.vmem_to_hbm [thread:$0]  %s1793_s13, 32, %s3151_s5, [#allocation3]  }
 0x28d   :  { %2397 = dma.done.wait [#allocation3], 32  }
 0x28e   :  { %2398 = vsyncadd [#allocation3], 4294967264 }
 0x28f   :  { %1799 = vsyncpa [#allocation3], 1 }

</bundles_post_ra>
